<compile_context>
chip_gen: v5e
topology: v5e:2x2
jax: 0.10.0
libtpu: 0.0.40
codegen_flags: <defaults>
</compile_context>

<pallas_src>
import functools

import jax
import jax.numpy as jnp
from jax.experimental import pallas as pl
from jax.experimental.pallas import tpu as pltpu


def _resmodel_kernel(x_ref,
                     w0_ref, s0_ref, t0_ref,
                     w1_ref, s1_ref, t1_ref,
                     w2x0_ref, w2x1_ref, s2_ref, t2_ref,
                     w3x0_ref, w3x1_ref, w3x2_ref, b3_ref,
                     out_ref,
                     pad_x0, pad_x1, pad_x2,
                     *, l_valid):
    TB, Lp, K0 = x_ref.shape
    M = TB * Lp
    f32 = jnp.float32

    def write_padded(pad_ref, halo, val):
        # Interior first, then zero the front halo and the (right-halo +
        # L-padding) tail.  Unconditional on purpose: with a 'parallel' grid
        # axis (v7x megacore) the second core never executes step 0, so a
        # pl.when(program_id == 0) guard would leave its halos uninitialized.
        C = pad_ref.shape[2]
        pad_ref[:, halo:halo + Lp, :] = val.astype(pad_ref.dtype)
        pad_ref[:, :halo, :] = jnp.zeros((TB, halo, C), pad_ref.dtype)
        tail = pad_ref.shape[1] - (halo + l_valid)
        pad_ref[:, halo + l_valid:, :] = jnp.zeros((TB, tail, C), pad_ref.dtype)

    def tap_concat(pad_ref, ntaps):
        # One (M, ntaps*C) im2col matrix per source, built once and reused by
        # every conv that consumes this source.
        views = [pad_ref[:, k:k + Lp, :] for k in range(ntaps)]
        cat = jnp.concatenate(views, axis=-1)
        return cat.reshape(M, ntaps * pad_ref.shape[2])

    # ---- conv2d1 (+ identity max_pool) + bn0; im2col was built in the wrapper
    h0 = jnp.dot(x_ref[...].reshape(M, K0), w0_ref[...],
                 preferred_element_type=f32)
    x0 = h0 * s0_ref[...] + t0_ref[...]                          # (M, 64) f32

    # ---- conv1d1 (k=7, pad=3) + bn1 + relu -----------------------------------
    write_padded(pad_x0, 3, x0.reshape(TB, Lp, 64))
    cx0 = tap_concat(pad_x0, 7)                                  # (M, 448)
    h1 = jnp.dot(cx0, w1_ref[...], preferred_element_type=f32)
    x1 = jnp.maximum(h1 * s1_ref[...] + t1_ref[...], 0.0)

    # ---- cat([x0, x1]) -> conv1d2 (k=5, pad=2) + bn2 + relu ------------------
    # Reuses cx0; the x0-tap weight rows were zero-padded host-side so no
    # lane slicing or im2col re-concat is needed in the kernel.
    write_padded(pad_x1, 2, x1.reshape(TB, Lp, 64))
    cx1 = tap_concat(pad_x1, 5)                                  # (M, 320)
    h2 = (jnp.dot(cx0, w2x0_ref[...], preferred_element_type=f32) +
          jnp.dot(cx1, w2x1_ref[...], preferred_element_type=f32))
    x2 = jnp.maximum(h2 * s2_ref[...] + t2_ref[...], 0.0)

    # ---- cat([x0, x1, x2]) -> conv1d3 (k=3, pad=1) ---------------------------
    write_padded(pad_x2, 1, x2.reshape(TB, Lp, 64))
    cx2 = tap_concat(pad_x2, 3)                                  # (M, 192)
    out = (jnp.dot(cx0, w3x0_ref[...], preferred_element_type=f32) +
           jnp.dot(cx1, w3x1_ref[...], preferred_element_type=f32) +
           jnp.dot(cx2, w3x2_ref[...], preferred_element_type=f32) +
           b3_ref[...])

    out_ref[...] = out.reshape(TB, Lp, 6).astype(out_ref.dtype)


def prepare_params(params, matmul_dtype=jnp.float32):
    """Torch-layout params -> fused kernel params.  Call ONCE and reuse.

    * conv biases folded into the BN shift: (h + b)*s + t == h*s + (b*s + t)
    * conv1d2 / conv1d3 weights split per source (x0/x1/x2) and zero-padded so
      they multiply the reusable full per-source tap concats directly:
        - x0 taps of conv1d2 sit at offsets 1..5 of the 7-tap x0 concat,
        - x0 taps of conv1d3 at 2..4,  x1 taps of conv1d3 at 1..3 of the
          5-tap x1 concat,  x2 taps of conv1d3 at 0..2.
    * weight matrices cast to `matmul_dtype` (bf16 recommended on v6e/v7x);
      BN scale/shift and the final bias stay f32.
    """
    (w0, b0, s0, t0, w1, b1, s1, t1, w2, b2, s2, t2, w3, b3) = params
    f32 = jnp.float32
    W0 = w0.reshape(-1, w0.shape[-1])                            # (9*Cin, 64)
    T0 = b0 * s0 + t0
    W1 = w1.reshape(-1, 64)                                      # (448, 64)
    T1 = b1 * s1 + t1
    W2x0 = jnp.zeros((7, 64, 64), f32).at[1:6].set(w2[:, :64, :]).reshape(-1, 64)
    W2x1 = w2[:, 64:, :].reshape(-1, 64)                         # (320, 64)
    T2 = b2 * s2 + t2
    W3x0 = jnp.zeros((7, 64, 6), f32).at[2:5].set(w3[:, :64, :]).reshape(-1, 6)
    W3x1 = jnp.zeros((5, 64, 6), f32).at[1:4].set(w3[:, 64:128, :]).reshape(-1, 6)
    W3x2 = w3[:, 128:, :].reshape(-1, 6)                         # (192, 6)
    c = lambda w: w.astype(matmul_dtype)
    return (c(W0), s0, T0, c(W1), s1, T1, c(W2x0), c(W2x1), s2, T2,
            c(W3x0), c(W3x1), c(W3x2), b3)


def _pick_batch_block(B, L_pad, target_rows=1024):
    """Largest divisor TB of B with TB*L_pad <= target_rows, preferring an even
    number of grid steps (v7x megacore) and at least 2 steps."""
    divisors = [d for d in range(1, B + 1) if B % d == 0]
    fits = [d for d in divisors if d * L_pad <= target_rows] or [1]
    even_steps = [d for d in fits if (B // d) % 2 == 0]
    multi_steps = [d for d in fits if B // d >= 2]
    if even_steps:
        return max(even_steps)
    if multi_steps:
        return max(multi_steps)
    return max(fits)


def resmodel_pool_forward(x, prepared, *, batch_block=None):
    (W0, s0, T0, W1, s1, T1, W2x0, W2x1, s2, T2, W3x0, W3x1, W3x2, b3) = prepared
    B, L, Cin = x.shape
    mm_dtype = W0.dtype
    assert W0.shape[0] == 9 * Cin, (W0.shape, Cin)

    # Pad L to a sublane multiple so in-kernel reshapes / interior scratch
    # stores are layout-preserving (8 sublanes f32, 16 for bf16).  Padded tail
    # rows are zeroed inside the kernel and sliced off below.
    sub = 16 if mm_dtype == jnp.bfloat16 else 8
    L_pad = ((L + sub - 1) // sub) * sub

    # Layer-1 im2col hoisted to XLA: the Cin-lane-narrow input would otherwise
    # force the worst relayout pattern (9-way concat of 16-lane pieces) in the
    # kernel.  The input is tiny, so the 9x read amplification is negligible.
    xp = jnp.pad(x.astype(jnp.float32), ((0, 0), (4, 4 + L_pad - L), (0, 0)))
    x_im = jnp.concatenate([xp[:, k:k + L_pad, :] for k in range(9)],
                           axis=-1).astype(mm_dtype)             # (B, L_pad, 9*Cin)

    TB = _pick_batch_block(B, L_pad) if batch_block is None else batch_block
    assert B % TB == 0, (B, TB)

    def full(a):
        return pl.BlockSpec(a.shape, lambda i, _n=a.ndim: (0,) * _n)

    flops = 2 * B * L_pad * (9 * Cin * 64 + 448 * 64 + 768 * 64 + 960 * 6)
    bytes_accessed = int(x_im.size) * x_im.dtype.itemsize \
        + sum(int(p.size) * p.dtype.itemsize for p in prepared) \
        + B * L_pad * 6 * 4
    cost = pl.CostEstimate(flops=int(flops), transcendentals=0,
                           bytes_accessed=int(bytes_accessed))

    out = pl.pallas_call(
        functools.partial(_resmodel_kernel, l_valid=L),
        out_shape=jax.ShapeDtypeStruct((B, L_pad, 6), jnp.float32),
        grid_spec=pltpu.PrefetchScalarGridSpec(
            num_scalar_prefetch=0,
            grid=(B // TB,),
            in_specs=[
                pl.BlockSpec((TB, L_pad, 9 * Cin), lambda i: (i, 0, 0)),
                full(W0), full(s0), full(T0),
                full(W1), full(s1), full(T1),
                full(W2x0), full(W2x1), full(s2), full(T2),
                full(W3x0), full(W3x1), full(W3x2), full(b3),
            ],
            out_specs=pl.BlockSpec((TB, L_pad, 6), lambda i: (i, 0, 0)),
            scratch_shapes=[
                pltpu.VMEM((TB, L_pad + 6, 64), mm_dtype),   # padded x0 (halo 3)
                pltpu.VMEM((TB, L_pad + 4, 64), mm_dtype),   # padded x1 (halo 2)
                pltpu.VMEM((TB, L_pad + 2, 64), mm_dtype),   # padded x2 (halo 1)
            ],
        ),
        compiler_params=pltpu.CompilerParams(
            dimension_semantics=("parallel",),
            vmem_limit_bytes=48 * 1024 * 1024),
        cost_estimate=cost,
    )(x_im, *prepared)
    return out[:, :L, :]


def init_params(key, in_size):
    ks = jax.random.split(key, 11)

    def rnd(k, shape, scale=0.1):
        return scale * jax.random.normal(k, shape, dtype=jnp.float32)

    def bn(k, c=64):
        k1, k2, k3, k4 = jax.random.split(k, 4)
        gamma = 1.0 + 0.1 * jax.random.normal(k1, (c,), jnp.float32)
        beta = 0.1 * jax.random.normal(k2, (c,), jnp.float32)
        mean = 0.1 * jax.random.normal(k3, (c,), jnp.float32)
        var = 0.5 + jnp.abs(jax.random.normal(k4, (c,), jnp.float32))
        scale = gamma / jnp.sqrt(var + 1e-5)
        shift = beta - mean * scale
        return scale.reshape(1, c), shift.reshape(1, c)

    # conv2d1 torch weight (64, 1, 9, in_size) -> stored as (9, in_size, 64)
    w0 = rnd(ks[0], (9, in_size, 64)); b0 = rnd(ks[1], (1, 64))
    s0, t0 = bn(ks[2])
    # conv1d1 torch weight (64, 64, 7) -> (7, 64, 64)
    w1 = rnd(ks[3], (7, 64, 64)); b1 = rnd(ks[4], (1, 64))
    s1, t1 = bn(ks[5])
    # conv1d2 torch weight (64, 128, 5) -> (5, 128, 64)
    w2 = rnd(ks[6], (5, 128, 64)); b2 = rnd(ks[7], (1, 64))
    s2, t2 = bn(ks[8])
    # conv1d3 torch weight (6, 192, 3) -> (3, 192, 6)
    w3 = rnd(ks[9], (3, 192, 6)); b3 = rnd(ks[10], (1, 6))
    return (w0, b0, s0, t0, w1, b1, s1, t1, w2, b2, s2, t2, w3, b3)


def ref_forward(x, params):
    # pure-JAX reference (same math, vectorised over batch) for verification
    (w0, b0, s0, t0, w1, b1, s1, t1, w2, b2, s2, t2, w3, b3) = params
    B, L, Cin = x.shape

    def conv1d(h, w, b, pad):
        K = w.shape[0]
        hp = jnp.pad(h, ((0, 0), (pad, pad), (0, 0)))
        out = jnp.broadcast_to(b, (B, L, w.shape[2])).astype(jnp.float32)
        for k in range(K):
            out = out + jnp.einsum('blc,cd->bld', hp[:, k:k + L, :], w[k])
        return out

    x0 = conv1d(x, w0, b0, 4) * s0 + t0
    x1 = jax.nn.relu(conv1d(x0, w1, b1, 3) * s1 + t1)
    x2 = jax.nn.relu(conv1d(jnp.concatenate([x0, x1], -1), w2, b2, 2) * s2 + t2)
    return conv1d(jnp.concatenate([x0, x1, x2], -1), w3, b3, 1)


if __name__ == "__main__":
    key = jax.random.PRNGKey(0)
    kx, kp = jax.random.split(key)
    B, L, in_size = 2, 16, 16
    x = jax.random.normal(kx, (B, L, in_size), dtype=jnp.float32)
    params = init_params(kp, in_size)
    ref = ref_forward(x, params)

    fwd = jax.jit(resmodel_pool_forward)

    # f32 matmul path — matches the PyTorch module numerics.
    prep_f32 = prepare_params(params, matmul_dtype=jnp.float32)
    out = jax.block_until_ready(fwd(x, prep_f32))
    assert out.shape == (B, L, 6), out.shape
    assert jnp.allclose(out, ref, atol=1e-4, rtol=1e-4), \
        float(jnp.max(jnp.abs(out - ref)))

    # bf16 matmul-input path (recommended on v6e/v7x) — looser tolerance.
    prep_bf16 = prepare_params(params, matmul_dtype=jnp.bfloat16)
    out_bf16 = jax.block_until_ready(fwd(x, prep_bf16))
    assert out_bf16.shape == (B, L, 6), out_bf16.shape
    assert jnp.allclose(out_bf16, ref, atol=2e-1, rtol=5e-2), \
        float(jnp.max(jnp.abs(out_bf16 - ref)))

    print("KERNEL_OK")
</pallas_src>

<mosaic_0001>
module attributes {stable_mosaic.version = 11 : i64} {
  func.func @_resmodel_kernel(%arg0: i32, %arg1: memref<1x16x144xf32, #tpu.memory_space<vmem>>, %arg2: memref<144x64xf32, #tpu.memory_space<vmem>>, %arg3: memref<1x64xf32, #tpu.memory_space<vmem>>, %arg4: memref<1x64xf32, #tpu.memory_space<vmem>>, %arg5: memref<448x64xf32, #tpu.memory_space<vmem>>, %arg6: memref<1x64xf32, #tpu.memory_space<vmem>>, %arg7: memref<1x64xf32, #tpu.memory_space<vmem>>, %arg8: memref<448x64xf32, #tpu.memory_space<vmem>>, %arg9: memref<320x64xf32, #tpu.memory_space<vmem>>, %arg10: memref<1x64xf32, #tpu.memory_space<vmem>>, %arg11: memref<1x64xf32, #tpu.memory_space<vmem>>, %arg12: memref<448x6xf32, #tpu.memory_space<vmem>>, %arg13: memref<320x6xf32, #tpu.memory_space<vmem>>, %arg14: memref<192x6xf32, #tpu.memory_space<vmem>>, %arg15: memref<1x6xf32, #tpu.memory_space<vmem>>, %arg16: memref<1x16x6xf32, #tpu.memory_space<vmem>>, %arg17: memref<1x22x64xf32, #tpu.memory_space<vmem>>, %arg18: memref<1x20x64xf32, #tpu.memory_space<vmem>>, %arg19: memref<1x18x64xf32, #tpu.memory_space<vmem>>) attributes {dimension_semantics = [#tpu.dimension_semantics<parallel>], iteration_bounds = array<i64: 2>, scalar_prefetch = 0 : i64, scratch_operands = 3 : i64, tpu.core_type = #tpu.core_type<tc>, window_params = [{transform_indices = @transform_0, window_bounds = array<i64: 1, 16, 144>}, {pipeline_mode = #tpu.pipeline_mode<synchronous>, transform_indices = @transform_1, window_bounds = array<i64: 144, 64>}, {pipeline_mode = #tpu.pipeline_mode<synchronous>, transform_indices = @transform_2, window_bounds = array<i64: 1, 64>}, {pipeline_mode = #tpu.pipeline_mode<synchronous>, transform_indices = @transform_3, window_bounds = array<i64: 1, 64>}, {pipeline_mode = #tpu.pipeline_mode<synchronous>, transform_indices = @transform_4, window_bounds = array<i64: 448, 64>}, {pipeline_mode = #tpu.pipeline_mode<synchronous>, transform_indices = @transform_5, window_bounds = array<i64: 1, 64>}, {pipeline_mode = #tpu.pipeline_mode<synchronous>, transform_indices = @transform_6, window_bounds = array<i64: 1, 64>}, {pipeline_mode = #tpu.pipeline_mode<synchronous>, transform_indices = @transform_7, window_bounds = array<i64: 448, 64>}, {pipeline_mode = #tpu.pipeline_mode<synchronous>, transform_indices = @transform_8, window_bounds = array<i64: 320, 64>}, {pipeline_mode = #tpu.pipeline_mode<synchronous>, transform_indices = @transform_9, window_bounds = array<i64: 1, 64>}, {pipeline_mode = #tpu.pipeline_mode<synchronous>, transform_indices = @transform_10, window_bounds = array<i64: 1, 64>}, {pipeline_mode = #tpu.pipeline_mode<synchronous>, transform_indices = @transform_11, window_bounds = array<i64: 448, 6>}, {pipeline_mode = #tpu.pipeline_mode<synchronous>, transform_indices = @transform_12, window_bounds = array<i64: 320, 6>}, {pipeline_mode = #tpu.pipeline_mode<synchronous>, transform_indices = @transform_13, window_bounds = array<i64: 192, 6>}, {pipeline_mode = #tpu.pipeline_mode<synchronous>, transform_indices = @transform_14, window_bounds = array<i64: 1, 6>}, {transform_indices = @transform_15, window_bounds = array<i64: 1, 16, 6>}]} {
    %c0 = arith.constant 0 : index
    %c0_0 = arith.constant 0 : index
    %c0_1 = arith.constant 0 : index
    %0 = vector.load %arg1[%c0, %c0_0, %c0_1] : memref<1x16x144xf32, #tpu.memory_space<vmem>>, vector<1x16x144xf32>
    %1 = vector.shape_cast %0 : vector<1x16x144xf32> to vector<16x144xf32>
    %c0_2 = arith.constant 0 : index
    %c0_3 = arith.constant 0 : index
    %2 = vector.load %arg2[%c0_2, %c0_3] : memref<144x64xf32, #tpu.memory_space<vmem>>, vector<144x64xf32>
    %cst = arith.constant dense<0.000000e+00> : vector<16x64xf32>
    %3 = tpu.matmul %1, %2, %cst {dimension_numbers = #tpu.dot_dimension_numbers<[1], [0], [0], [1], [0, 0, 1, 1], [], []>} : vector<16x144xf32>, vector<144x64xf32>, vector<16x64xf32> -> vector<16x64xf32>
    %c0_4 = arith.constant 0 : index
    %c0_5 = arith.constant 0 : index
    %4 = vector.load %arg3[%c0_4, %c0_5] : memref<1x64xf32, #tpu.memory_space<vmem>>, vector<1x64xf32>
    %5 = vector.broadcast %4 : vector<1x64xf32> to vector<16x64xf32>
    %6 = arith.mulf %3, %5 : vector<16x64xf32>
    %c0_6 = arith.constant 0 : index
    %c0_7 = arith.constant 0 : index
    %7 = vector.load %arg4[%c0_6, %c0_7] : memref<1x64xf32, #tpu.memory_space<vmem>>, vector<1x64xf32>
    %8 = vector.broadcast %7 : vector<1x64xf32> to vector<16x64xf32>
    %9 = arith.addf %6, %8 : vector<16x64xf32>
    %10 = vector.shape_cast %9 : vector<16x64xf32> to vector<1x16x64xf32>
    %c0_8 = arith.constant 0 : index
    %c3 = arith.constant 3 : index
    %c0_9 = arith.constant 0 : index
    %11 = vector.load %arg17[%c0_8, %c3, %c0_9] : memref<1x22x64xf32, #tpu.memory_space<vmem>>, vector<1x16x64xf32>
    tpu.vector_store %arg17[%c0_8, %c3, %c0_9], %10 {strides = array<i32>} : memref<1x22x64xf32, #tpu.memory_space<vmem>>, vector<1x16x64xf32>,
    %cst_10 = arith.constant 0.000000e+00 : f32
    %12 = vector.broadcast %cst_10 : f32 to vector<1x3x64xf32>
    %c0_11 = arith.constant 0 : index
    %c0_12 = arith.constant 0 : index
    %c0_13 = arith.constant 0 : index
    %13 = vector.load %arg17[%c0_11, %c0_12, %c0_13] : memref<1x22x64xf32, #tpu.memory_space<vmem>>, vector<1x3x64xf32>
    tpu.vector_store %arg17[%c0_11, %c0_12, %c0_13], %12 {strides = array<i32>} : memref<1x22x64xf32, #tpu.memory_space<vmem>>, vector<1x3x64xf32>,
    %cst_14 = arith.constant 0.000000e+00 : f32
    %14 = vector.broadcast %cst_14 : f32 to vector<1x3x64xf32>
    %c0_15 = arith.constant 0 : index
    %c19 = arith.constant 19 : index
    %c0_16 = arith.constant 0 : index
    %15 = vector.load %arg17[%c0_15, %c19, %c0_16] : memref<1x22x64xf32, #tpu.memory_space<vmem>>, vector<1x3x64xf32>
    tpu.vector_store %arg17[%c0_15, %c19, %c0_16], %14 {strides = array<i32>} : memref<1x22x64xf32, #tpu.memory_space<vmem>>, vector<1x3x64xf32>,
    %c0_17 = arith.constant 0 : index
    %c0_18 = arith.constant 0 : index
    %c0_19 = arith.constant 0 : index
    %16 = vector.load %arg17[%c0_17, %c0_18, %c0_19] : memref<1x22x64xf32, #tpu.memory_space<vmem>>, vector<1x16x64xf32>
    %c0_20 = arith.constant 0 : index
    %c1 = arith.constant 1 : index
    %c0_21 = arith.constant 0 : index
    %17 = vector.load %arg17[%c0_20, %c1, %c0_21] : memref<1x22x64xf32, #tpu.memory_space<vmem>>, vector<1x16x64xf32>
    %c0_22 = arith.constant 0 : index
    %c2 = arith.constant 2 : index
    %c0_23 = arith.constant 0 : index
    %18 = vector.load %arg17[%c0_22, %c2, %c0_23] : memref<1x22x64xf32, #tpu.memory_space<vmem>>, vector<1x16x64xf32>
    %c0_24 = arith.constant 0 : index
    %c3_25 = arith.constant 3 : index
    %c0_26 = arith.constant 0 : index
    %19 = vector.load %arg17[%c0_24, %c3_25, %c0_26] : memref<1x22x64xf32, #tpu.memory_space<vmem>>, vector<1x16x64xf32>
    %c0_27 = arith.constant 0 : index
    %c4 = arith.constant 4 : index
    %c0_28 = arith.constant 0 : index
    %20 = vector.load %arg17[%c0_27, %c4, %c0_28] : memref<1x22x64xf32, #tpu.memory_space<vmem>>, vector<1x16x64xf32>
    %c0_29 = arith.constant 0 : index
    %c5 = arith.constant 5 : index
    %c0_30 = arith.constant 0 : index
    %21 = vector.load %arg17[%c0_29, %c5, %c0_30] : memref<1x22x64xf32, #tpu.memory_space<vmem>>, vector<1x16x64xf32>
    %c0_31 = arith.constant 0 : index
    %c6 = arith.constant 6 : index
    %c0_32 = arith.constant 0 : index
    %22 = vector.load %arg17[%c0_31, %c6, %c0_32] : memref<1x22x64xf32, #tpu.memory_space<vmem>>, vector<1x16x64xf32>
    %23 = tpu.concatenate %16, %17, %18, %19, %20, %21, %22 in 2 : vector<1x16x64xf32>, vector<1x16x64xf32>, vector<1x16x64xf32>, vector<1x16x64xf32>, vector<1x16x64xf32>, vector<1x16x64xf32>, vector<1x16x64xf32> -> vector<1x16x448xf32>
    %24 = vector.shape_cast %23 : vector<1x16x448xf32> to vector<16x448xf32>
    %c0_33 = arith.constant 0 : index
    %c0_34 = arith.constant 0 : index
    %25 = vector.load %arg5[%c0_33, %c0_34] : memref<448x64xf32, #tpu.memory_space<vmem>>, vector<448x64xf32>
    %cst_35 = arith.constant dense<0.000000e+00> : vector<16x64xf32>
    %26 = tpu.matmul %24, %25, %cst_35 {dimension_numbers = #tpu.dot_dimension_numbers<[1], [0], [0], [1], [0, 0, 1, 1], [], []>} : vector<16x448xf32>, vector<448x64xf32>, vector<16x64xf32> -> vector<16x64xf32>
    %c0_36 = arith.constant 0 : index
    %c0_37 = arith.constant 0 : index
    %27 = vector.load %arg6[%c0_36, %c0_37] : memref<1x64xf32, #tpu.memory_space<vmem>>, vector<1x64xf32>
    %28 = vector.broadcast %27 : vector<1x64xf32> to vector<16x64xf32>
    %29 = arith.mulf %26, %28 : vector<16x64xf32>
    %c0_38 = arith.constant 0 : index
    %c0_39 = arith.constant 0 : index
    %30 = vector.load %arg7[%c0_38, %c0_39] : memref<1x64xf32, #tpu.memory_space<vmem>>, vector<1x64xf32>
    %31 = vector.broadcast %30 : vector<1x64xf32> to vector<16x64xf32>
    %32 = arith.addf %29, %31 : vector<16x64xf32>
    %cst_40 = arith.constant 0.000000e+00 : f32
    %33 = vector.broadcast %cst_40 : f32 to vector<16x64xf32>
    %34 = arith.maximumf %32, %33 : vector<16x64xf32>
    %35 = vector.shape_cast %34 : vector<16x64xf32> to vector<1x16x64xf32>
    %c0_41 = arith.constant 0 : index
    %c2_42 = arith.constant 2 : index
    %c0_43 = arith.constant 0 : index
    %36 = vector.load %arg18[%c0_41, %c2_42, %c0_43] : memref<1x20x64xf32, #tpu.memory_space<vmem>>, vector<1x16x64xf32>
    tpu.vector_store %arg18[%c0_41, %c2_42, %c0_43], %35 {strides = array<i32>} : memref<1x20x64xf32, #tpu.memory_space<vmem>>, vector<1x16x64xf32>,
    %cst_44 = arith.constant 0.000000e+00 : f32
    %37 = vector.broadcast %cst_44 : f32 to vector<1x2x64xf32>
    %c0_45 = arith.constant 0 : index
    %c0_46 = arith.constant 0 : index
    %c0_47 = arith.constant 0 : index
    %38 = vector.load %arg18[%c0_45, %c0_46, %c0_47] : memref<1x20x64xf32, #tpu.memory_space<vmem>>, vector<1x2x64xf32>
    tpu.vector_store %arg18[%c0_45, %c0_46, %c0_47], %37 {strides = array<i32>} : memref<1x20x64xf32, #tpu.memory_space<vmem>>, vector<1x2x64xf32>,
    %cst_48 = arith.constant 0.000000e+00 : f32
    %39 = vector.broadcast %cst_48 : f32 to vector<1x2x64xf32>
    %c0_49 = arith.constant 0 : index
    %c18 = arith.constant 18 : index
    %c0_50 = arith.constant 0 : index
    %40 = vector.load %arg18[%c0_49, %c18, %c0_50] : memref<1x20x64xf32, #tpu.memory_space<vmem>>, vector<1x2x64xf32>
    tpu.vector_store %arg18[%c0_49, %c18, %c0_50], %39 {strides = array<i32>} : memref<1x20x64xf32, #tpu.memory_space<vmem>>, vector<1x2x64xf32>,
    %c0_51 = arith.constant 0 : index
    %c0_52 = arith.constant 0 : index
    %c0_53 = arith.constant 0 : index
    %41 = vector.load %arg18[%c0_51, %c0_52, %c0_53] : memref<1x20x64xf32, #tpu.memory_space<vmem>>, vector<1x16x64xf32>
    %c0_54 = arith.constant 0 : index
    %c1_55 = arith.constant 1 : index
    %c0_56 = arith.constant 0 : index
    %42 = vector.load %arg18[%c0_54, %c1_55, %c0_56] : memref<1x20x64xf32, #tpu.memory_space<vmem>>, vector<1x16x64xf32>
    %c0_57 = arith.constant 0 : index
    %c2_58 = arith.constant 2 : index
    %c0_59 = arith.constant 0 : index
    %43 = vector.load %arg18[%c0_57, %c2_58, %c0_59] : memref<1x20x64xf32, #tpu.memory_space<vmem>>, vector<1x16x64xf32>
    %c0_60 = arith.constant 0 : index
    %c3_61 = arith.constant 3 : index
    %c0_62 = arith.constant 0 : index
    %44 = vector.load %arg18[%c0_60, %c3_61, %c0_62] : memref<1x20x64xf32, #tpu.memory_space<vmem>>, vector<1x16x64xf32>
    %c0_63 = arith.constant 0 : index
    %c4_64 = arith.constant 4 : index
    %c0_65 = arith.constant 0 : index
    %45 = vector.load %arg18[%c0_63, %c4_64, %c0_65] : memref<1x20x64xf32, #tpu.memory_space<vmem>>, vector<1x16x64xf32>
    %46 = tpu.concatenate %41, %42, %43, %44, %45 in 2 : vector<1x16x64xf32>, vector<1x16x64xf32>, vector<1x16x64xf32>, vector<1x16x64xf32>, vector<1x16x64xf32> -> vector<1x16x320xf32>
    %47 = vector.shape_cast %46 : vector<1x16x320xf32> to vector<16x320xf32>
    %c0_66 = arith.constant 0 : index
    %c0_67 = arith.constant 0 : index
    %48 = vector.load %arg8[%c0_66, %c0_67] : memref<448x64xf32, #tpu.memory_space<vmem>>, vector<448x64xf32>
    %cst_68 = arith.constant dense<0.000000e+00> : vector<16x64xf32>
    %49 = tpu.matmul %24, %48, %cst_68 {dimension_numbers = #tpu.dot_dimension_numbers<[1], [0], [0], [1], [0, 0, 1, 1], [], []>} : vector<16x448xf32>, vector<448x64xf32>, vector<16x64xf32> -> vector<16x64xf32>
    %c0_69 = arith.constant 0 : index
    %c0_70 = arith.constant 0 : index
    %50 = vector.load %arg9[%c0_69, %c0_70] : memref<320x64xf32, #tpu.memory_space<vmem>>, vector<320x64xf32>
    %cst_71 = arith.constant dense<0.000000e+00> : vector<16x64xf32>
    %51 = tpu.matmul %47, %50, %cst_71 {dimension_numbers = #tpu.dot_dimension_numbers<[1], [0], [0], [1], [0, 0, 1, 1], [], []>} : vector<16x320xf32>, vector<320x64xf32>, vector<16x64xf32> -> vector<16x64xf32>
    %52 = arith.addf %49, %51 : vector<16x64xf32>
    %c0_72 = arith.constant 0 : index
    %c0_73 = arith.constant 0 : index
    %53 = vector.load %arg10[%c0_72, %c0_73] : memref<1x64xf32, #tpu.memory_space<vmem>>, vector<1x64xf32>
    %54 = vector.broadcast %53 : vector<1x64xf32> to vector<16x64xf32>
    %55 = arith.mulf %52, %54 : vector<16x64xf32>
    %c0_74 = arith.constant 0 : index
    %c0_75 = arith.constant 0 : index
    %56 = vector.load %arg11[%c0_74, %c0_75] : memref<1x64xf32, #tpu.memory_space<vmem>>, vector<1x64xf32>
    %57 = vector.broadcast %56 : vector<1x64xf32> to vector<16x64xf32>
    %58 = arith.addf %55, %57 : vector<16x64xf32>
    %cst_76 = arith.constant 0.000000e+00 : f32
    %59 = vector.broadcast %cst_76 : f32 to vector<16x64xf32>
    %60 = arith.maximumf %58, %59 : vector<16x64xf32>
    %61 = vector.shape_cast %60 : vector<16x64xf32> to vector<1x16x64xf32>
    %c0_77 = arith.constant 0 : index
    %c1_78 = arith.constant 1 : index
    %c0_79 = arith.constant 0 : index
    %62 = vector.load %arg19[%c0_77, %c1_78, %c0_79] : memref<1x18x64xf32, #tpu.memory_space<vmem>>, vector<1x16x64xf32>
    tpu.vector_store %arg19[%c0_77, %c1_78, %c0_79], %61 {strides = array<i32>} : memref<1x18x64xf32, #tpu.memory_space<vmem>>, vector<1x16x64xf32>,
    %cst_80 = arith.constant 0.000000e+00 : f32
    %63 = vector.broadcast %cst_80 : f32 to vector<1x1x64xf32>
    %c0_81 = arith.constant 0 : index
    %c0_82 = arith.constant 0 : index
    %c0_83 = arith.constant 0 : index
    %64 = vector.load %arg19[%c0_81, %c0_82, %c0_83] : memref<1x18x64xf32, #tpu.memory_space<vmem>>, vector<1x1x64xf32>
    tpu.vector_store %arg19[%c0_81, %c0_82, %c0_83], %63 {strides = array<i32>} : memref<1x18x64xf32, #tpu.memory_space<vmem>>, vector<1x1x64xf32>,
    %cst_84 = arith.constant 0.000000e+00 : f32
    %65 = vector.broadcast %cst_84 : f32 to vector<1x1x64xf32>
    %c0_85 = arith.constant 0 : index
    %c17 = arith.constant 17 : index
    %c0_86 = arith.constant 0 : index
    %66 = vector.load %arg19[%c0_85, %c17, %c0_86] : memref<1x18x64xf32, #tpu.memory_space<vmem>>, vector<1x1x64xf32>
    tpu.vector_store %arg19[%c0_85, %c17, %c0_86], %65 {strides = array<i32>} : memref<1x18x64xf32, #tpu.memory_space<vmem>>, vector<1x1x64xf32>,
    %c0_87 = arith.constant 0 : index
    %c0_88 = arith.constant 0 : index
    %c0_89 = arith.constant 0 : index
    %67 = vector.load %arg19[%c0_87, %c0_88, %c0_89] : memref<1x18x64xf32, #tpu.memory_space<vmem>>, vector<1x16x64xf32>
    %c0_90 = arith.constant 0 : index
    %c1_91 = arith.constant 1 : index
    %c0_92 = arith.constant 0 : index
    %68 = vector.load %arg19[%c0_90, %c1_91, %c0_92] : memref<1x18x64xf32, #tpu.memory_space<vmem>>, vector<1x16x64xf32>
    %c0_93 = arith.constant 0 : index
    %c2_94 = arith.constant 2 : index
    %c0_95 = arith.constant 0 : index
    %69 = vector.load %arg19[%c0_93, %c2_94, %c0_95] : memref<1x18x64xf32, #tpu.memory_space<vmem>>, vector<1x16x64xf32>
    %70 = tpu.concatenate %67, %68, %69 in 2 : vector<1x16x64xf32>, vector<1x16x64xf32>, vector<1x16x64xf32> -> vector<1x16x192xf32>
    %71 = vector.shape_cast %70 : vector<1x16x192xf32> to vector<16x192xf32>
    %c0_96 = arith.constant 0 : index
    %c0_97 = arith.constant 0 : index
    %72 = vector.load %arg12[%c0_96, %c0_97] : memref<448x6xf32, #tpu.memory_space<vmem>>, vector<448x6xf32>
    %cst_98 = arith.constant dense<0.000000e+00> : vector<16x6xf32>
    %73 = tpu.matmul %24, %72, %cst_98 {dimension_numbers = #tpu.dot_dimension_numbers<[1], [0], [0], [1], [0, 0, 1, 1], [], []>} : vector<16x448xf32>, vector<448x6xf32>, vector<16x6xf32> -> vector<16x6xf32>
    %c0_99 = arith.constant 0 : index
    %c0_100 = arith.constant 0 : index
    %74 = vector.load %arg13[%c0_99, %c0_100] : memref<320x6xf32, #tpu.memory_space<vmem>>, vector<320x6xf32>
    %cst_101 = arith.constant dense<0.000000e+00> : vector<16x6xf32>
    %75 = tpu.matmul %47, %74, %cst_101 {dimension_numbers = #tpu.dot_dimension_numbers<[1], [0], [0], [1], [0, 0, 1, 1], [], []>} : vector<16x320xf32>, vector<320x6xf32>, vector<16x6xf32> -> vector<16x6xf32>
    %76 = arith.addf %73, %75 : vector<16x6xf32>
    %c0_102 = arith.constant 0 : index
    %c0_103 = arith.constant 0 : index
    %77 = vector.load %arg14[%c0_102, %c0_103] : memref<192x6xf32, #tpu.memory_space<vmem>>, vector<192x6xf32>
    %cst_104 = arith.constant dense<0.000000e+00> : vector<16x6xf32>
    %78 = tpu.matmul %71, %77, %cst_104 {dimension_numbers = #tpu.dot_dimension_numbers<[1], [0], [0], [1], [0, 0, 1, 1], [], []>} : vector<16x192xf32>, vector<192x6xf32>, vector<16x6xf32> -> vector<16x6xf32>
    %79 = arith.addf %76, %78 : vector<16x6xf32>
    %c0_105 = arith.constant 0 : index
    %c0_106 = arith.constant 0 : index
    %80 = vector.load %arg15[%c0_105, %c0_106] : memref<1x6xf32, #tpu.memory_space<vmem>>, vector<1x6xf32>
    %81 = vector.broadcast %80 : vector<1x6xf32> to vector<16x6xf32>
    %82 = arith.addf %79, %81 : vector<16x6xf32>
    %83 = vector.shape_cast %82 : vector<16x6xf32> to vector<1x16x6xf32>
    %c0_107 = arith.constant 0 : index
    %c0_108 = arith.constant 0 : index
    %c0_109 = arith.constant 0 : index
    %84 = vector.load %arg16[%c0_107, %c0_108, %c0_109] : memref<1x16x6xf32, #tpu.memory_space<vmem>>, vector<1x16x6xf32>
    tpu.vector_store %arg16[%c0_107, %c0_108, %c0_109], %83 {strides = array<i32>} : memref<1x16x6xf32, #tpu.memory_space<vmem>>, vector<1x16x6xf32>,
    return
  }
  func.func @transform_0(%arg0: i32) -> (i32, i32, i32) {
    %c0_i32 = arith.constant 0 : i32
    %c0_i32_0 = arith.constant 0 : i32
    %c0_i32_1 = arith.constant 0 : i32
    return %arg0, %c0_i32, %c0_i32_0 : i32, i32, i32
  }
  func.func @transform_1(%arg0: i32) -> (i32, i32) {
    %c0_i32 = arith.constant 0 : i32
    %c0_i32_0 = arith.constant 0 : i32
    %c0_i32_1 = arith.constant 0 : i32
    return %c0_i32, %c0_i32_0 : i32, i32
  }
  func.func @transform_2(%arg0: i32) -> (i32, i32) {
    %c0_i32 = arith.constant 0 : i32
    %c0_i32_0 = arith.constant 0 : i32
    %c0_i32_1 = arith.constant 0 : i32
    return %c0_i32, %c0_i32_0 : i32, i32
  }
  func.func @transform_3(%arg0: i32) -> (i32, i32) {
    %c0_i32 = arith.constant 0 : i32
    %c0_i32_0 = arith.constant 0 : i32
    %c0_i32_1 = arith.constant 0 : i32
    return %c0_i32, %c0_i32_0 : i32, i32
  }
  func.func @transform_4(%arg0: i32) -> (i32, i32) {
    %c0_i32 = arith.constant 0 : i32
    %c0_i32_0 = arith.constant 0 : i32
    %c0_i32_1 = arith.constant 0 : i32
    return %c0_i32, %c0_i32_0 : i32, i32
  }
  func.func @transform_5(%arg0: i32) -> (i32, i32) {
    %c0_i32 = arith.constant 0 : i32
    %c0_i32_0 = arith.constant 0 : i32
    %c0_i32_1 = arith.constant 0 : i32
    return %c0_i32, %c0_i32_0 : i32, i32
  }
  func.func @transform_6(%arg0: i32) -> (i32, i32) {
    %c0_i32 = arith.constant 0 : i32
    %c0_i32_0 = arith.constant 0 : i32
    %c0_i32_1 = arith.constant 0 : i32
    return %c0_i32, %c0_i32_0 : i32, i32
  }
  func.func @transform_7(%arg0: i32) -> (i32, i32) {
    %c0_i32 = arith.constant 0 : i32
    %c0_i32_0 = arith.constant 0 : i32
    %c0_i32_1 = arith.constant 0 : i32
    return %c0_i32, %c0_i32_0 : i32, i32
  }
  func.func @transform_8(%arg0: i32) -> (i32, i32) {
    %c0_i32 = arith.constant 0 : i32
    %c0_i32_0 = arith.constant 0 : i32
    %c0_i32_1 = arith.constant 0 : i32
    return %c0_i32, %c0_i32_0 : i32, i32
  }
  func.func @transform_9(%arg0: i32) -> (i32, i32) {
    %c0_i32 = arith.constant 0 : i32
    %c0_i32_0 = arith.constant 0 : i32
    %c0_i32_1 = arith.constant 0 : i32
    return %c0_i32, %c0_i32_0 : i32, i32
  }
  func.func @transform_10(%arg0: i32) -> (i32, i32) {
    %c0_i32 = arith.constant 0 : i32
    %c0_i32_0 = arith.constant 0 : i32
    %c0_i32_1 = arith.constant 0 : i32
    return %c0_i32, %c0_i32_0 : i32, i32
  }
  func.func @transform_11(%arg0: i32) -> (i32, i32) {
    %c0_i32 = arith.constant 0 : i32
    %c0_i32_0 = arith.constant 0 : i32
    %c0_i32_1 = arith.constant 0 : i32
    return %c0_i32, %c0_i32_0 : i32, i32
  }
  func.func @transform_12(%arg0: i32) -> (i32, i32) {
    %c0_i32 = arith.constant 0 : i32
    %c0_i32_0 = arith.constant 0 : i32
    %c0_i32_1 = arith.constant 0 : i32
    return %c0_i32, %c0_i32_0 : i32, i32
  }
  func.func @transform_13(%arg0: i32) -> (i32, i32) {
    %c0_i32 = arith.constant 0 : i32
    %c0_i32_0 = arith.constant 0 : i32
    %c0_i32_1 = arith.constant 0 : i32
    return %c0_i32, %c0_i32_0 : i32, i32
  }
  func.func @transform_14(%arg0: i32) -> (i32, i32) {
    %c0_i32 = arith.constant 0 : i32
    %c0_i32_0 = arith.constant 0 : i32
    %c0_i32_1 = arith.constant 0 : i32
    return %c0_i32, %c0_i32_0 : i32, i32
  }
  func.func @transform_15(%arg0: i32) -> (i32, i32, i32) {
    %c0_i32 = arith.constant 0 : i32
    %c0_i32_0 = arith.constant 0 : i32
    %c0_i32_1 = arith.constant 0 : i32
    return %arg0, %c0_i32, %c0_i32_0 : i32, i32, i32
  }
}

</mosaic_0001>

<bundles_post_ra>
// kernel: resmodel_pool_forward.1
= control target key start
LH: loop header
LB: loop body
LE: loop exit
PB: predicated region body
PF: predicated region fallthrough
CT: control target
= control target key end

     0   :  { %s1702_s18 = smov 0   ;;  %s2724_s0 = inlined_call_operand.vmem [shape: f32[2,16,144], index: 0, kind: input, shape index: {}]   ;;  %s2725_s1 = inlined_call_operand.vmem [shape: f32[144,64], index: 1, kind: input, shape index: {}]   ;;  %s2726_s2 = inlined_call_operand.vmem [shape: f32[1,64], index: 2, kind: input, shape index: {}]   ;;  %s2727_s3 = inlined_call_operand.vmem [shape: f32[1,64], index: 3, kind: input, shape index: {}]   ;;  %s2728_s4 = inlined_call_operand.vmem [shape: f32[448,64], index: 4, kind: input, shape index: {}]   ;;  %s2729_s5 = inlined_call_operand.vmem [shape: f32[1,64], index: 5, kind: input, shape index: {}]   ;;  %s2730_s6 = inlined_call_operand.vmem [shape: f32[1,64], index: 6, kind: input, shape index: {}]   ;;  %s2731_s7 = inlined_call_operand.vmem [shape: f32[448,64], index: 7, kind: input, shape index: {}]   ;;  %s2732_s8 = inlined_call_operand.vmem [shape: f32[320,64], index: 8, kind: input, shape index: {}]   ;;  %s2733_s9 = inlined_call_operand.vmem [shape: f32[1,64], index: 9, kind: input, shape index: {}]   ;;  %s2734_s10 = inlined_call_operand.vmem [shape: f32[1,64], index: 10, kind: input, shape index: {}]   ;;  %s2735_s11 = inlined_call_operand.vmem [shape: f32[448,6], index: 11, kind: input, shape index: {}]   ;;  %s2736_s12 = inlined_call_operand.vmem [shape: f32[320,6], index: 12, kind: input, shape index: {}]   ;;  %s2737_s13 = inlined_call_operand.vmem [shape: f32[192,6], index: 13, kind: input, shape index: {}]   ;;  %s2738_s14 = inlined_call_operand.vmem [shape: f32[1,6], index: 14, kind: input, shape index: {}]   ;;  %s2739_s15 = inlined_call_operand.vmem [shape: f32[2,16,6], index: 15, kind: output, shape index: {}]  }
   0x1 LB: > { %s1532_s19 = sadd.s32 4294967295, %s1618_s18   ;;  %p1536_p0 = scmp.ge.s32.totalorder %s1618_s18, 1  ;;  %s1618_s18 = sphi %s1702_s18, %s25_s18  }
   0x2   : > { %p437_p1 = scmp.lt.s32.totalorder %s1618_s18, 3 }
   0x4   : > { %p438_p2 = pnand %p1536_p0, %p437_p1 }
   0x5   : > { %p485_p3 = scmp.lt.s32.totalorder (!%p438_p2), %s1532_s19, 1 }
   0x6   : > { %441 = sbr.rel (%p438_p2) target bundleno = 995 (0x3e3), region = 80 }
   0xb   : > { %v514_v0 = vld [vmem:[%s2725_s1 + $0x78] sm:$0xff]  ;;  %v513_v1 = vld [vmem:[%s2725_s1 + $0x70] sm:$0xff]  ;;  %v512_v2 = vld [vmem:[%s2725_s1 + $0x68] sm:$0xff]  ;;  %s2741_s19 = smov (!%p485_p3, %s1532_s19), 1  ;;  %vm517_vm0 = vcmask 130048   ;;  %vm585_vm1 = vcmask 518144  }
   0xc   : > { %524 = vmatpush.msra.mxu0 %v514_v0  ;;  %v511_v3 = vld [vmem:[%s2725_s1 + $0x60] sm:$0xff]  ;;  %s1557_s28 = sshll.u32 %s2741_s19, 5  ;;  %v516_v4 = vld [vmem:[%s2725_s1 + $0x88] sm:$0xff]  ;;  %v510_v6 = vld [vmem:[%s2725_s1 + $0x58] sm:$0xff]  ;;  %v1620_v23 = vmov 0.0   ;;  %vm582_vm2 = vcmask 523264  }
   0xd   : > { %v515_v5 = vld [vmem:[%s2725_s1 + $0x80] sm:$0xff]  ;;  %s1734_s22 = scalar_lea.vmem %s2724_s0, %s1557_s28  ;;  %561 = vmatpush.msra.mxu1 %v516_v4  ;;  %v509_v8 = vld [vmem:[%s2725_s1 + $0x50] sm:$0xff]  ;;  %v508_v9 = vld [vmem:[%s2725_s1 + $0x48] sm:$0xff]  ;;  %586 = vst.msk [vmem:[#allocation2] sm:$0x7] %vm585_vm1, %v1620_v23  ;;  %s1621_s28 = smov 64  }
   0xe   : > { %525 = vmatpush.msra.mxu0 %v513_v1  ;;  %v496_v7 = vld [vmem:[%s1734_s22 + $0x8] sm:$0xff]  ;;  %v507_v10 = vld [vmem:[%s2725_s1 + $0x40] sm:$0xff]  ;;  %v506_v11 = vld [vmem:[%s2725_s1 + $0x38] sm:$0xff]  ;;  %587 = vst.msk [vmem:[#allocation2 + $0x13] sm:$0x7] %vm585_vm1, %v1620_v23  ;;  %vm802_vm3 = vcmask 517120  }
   0xf   : > { %562 = vmatpush.msra.mxu1 %v515_v5  ;;  %v498_v12 = vld [vmem:[%s1734_s22 + $0x18] sm:$0xff]  ;;  %v505_v13 = vld [vmem:[%s2725_s1 + $0x30] sm:$0xff]  ;;  %v504_v14 = vld [vmem:[%s2725_s1 + $0x28] sm:$0xff]  ;;  %803 = vst.msk [vmem:[#allocation3] sm:$0x3] %vm802_vm3, %v1620_v23  ;;  %vm1114_vm4 = vcmask 516096  }
  0x10   : > { %526 = vmatpush.msra.mxu0 %v512_v2  ;;  %1541 = vmatmul.msk.f32.vlgmr.msra.gmra.mxu1 %vm517_vm0, %v496_v7  ;;  %v503_v15 = vld [vmem:[%s2725_s1 + $0x20] sm:$0xff]  ;;  %v502_v16 = vld [vmem:[%s2725_s1 + $0x18] sm:$0xff]  ;;  %v501_v17 = vld [vmem:[%s2725_s1 + $0x10] sm:$0xff]  ;;  %804 = vst.msk [vmem:[#allocation3 + $0x12] sm:$0x3] %vm802_vm3, %v1620_v23  ;;  %s1558_s16 = sshll.u32 %s2741_s19, 4 }
  0x11   : > { %v500_v18 = vld [vmem:[%s2725_s1 + $0x8] sm:$0xff]  ;;  %v499_v19 = vld [vmem:[%s2725_s1] sm:$0xff]  ;;  %v497_v21 = vld [vmem:[%s1734_s22 + $0x10] sm:$0xff]  ;;  %1115 = vst.msk [vmem:[#allocation4] sm:$0x1] %vm1114_vm4, %v1620_v23  ;;  %s494_s24 = scalar_lea.vmem %s2739_s15, %s1558_s16  ;;  %vm1474_vm5 = vcmask 48128  }
  0x12   : > { %527 = vmatpush.msra.mxu0 %v511_v3  ;;  %v495_v20 = vld [vmem:[%s1734_s22] sm:$0xff]  ;;  %v687_v22 = vld [vmem:[%s2728_s4 + $0x1b8] sm:$0xff]  ;;  %v686_v24 = vld [vmem:[%s2728_s4 + $0x1b0] sm:$0xff]  ;;  %1116 = vst.msk [vmem:[#allocation4 + $0x11] sm:$0x1] %vm1114_vm4, %v1620_v23 }
  0x13   : > { %v685_v25 = vld [vmem:[%s2728_s4 + $0x1a8] sm:$0xff]  ;;  %v684_v26 = vld [vmem:[%s2728_s4 + $0x1a0] sm:$0xff]  ;;  %v683_v27 = vld [vmem:[%s2728_s4 + $0x198] sm:$0xff] }
  0x14   : > { %528 = vmatpush.msra.mxu0 %v510_v6  ;;  %v682_v28 = vld [vmem:[%s2728_s4 + $0x190] sm:$0xff]  ;;  %v681_v29 = vld [vmem:[%s2728_s4 + $0x188] sm:$0xff]  ;;  %v680_v30 = vld [vmem:[%s2728_s4 + $0x180] sm:$0xff] }
  0x15   : > { %v1605_v32 = vld [vmem:[%s2726_s2] ss:$0 sm:$0xff]  ;;  %v647_v34 = vld [vmem:[%s2728_s4 + $0x78] sm:$0xff]  ;;  %v646_v38 = vld [vmem:[%s2728_s4 + $0x70] sm:$0xff] }
  0x16   : > { %529 = vmatpush.msra.mxu0 %v509_v8  ;;  %v1808_v33 = vld [vmem:[%s2727_s3] ss:$0 sm:$0xff]  ;;  %v663_v35 = vld [vmem:[%s2728_s4 + $0xf8] sm:$0xff]  ;;  %694 = vmatpush.msra.mxu2 %v647_v34  ;;  %v662_v39 = vld [vmem:[%s2728_s4 + $0xf0] sm:$0xff] }
  0x17   : > { %v850_v36 = vld [vmem:[%s2731_s7 + $0x78] sm:$0xff]  ;;  %717 = vmatpush.msra.mxu3 %v663_v35  ;;  %v849_v40 = vld [vmem:[%s2731_s7 + $0x70] sm:$0xff]  ;;  %v645_v42 = vld [vmem:[%s2728_s4 + $0x68] sm:$0xff] }
  0x18   : > { %530 = vmatpush.msra.mxu0 %v508_v9  ;;  %1542 = vmatmul.msk.f32.gmra.mxu1 %vm517_vm0, %v498_v12  ;;  %v661_v43 = vld [vmem:[%s2728_s4 + $0xe8] sm:$0xff]  ;;  %v679_v44 = vld [vmem:[%s2728_s4 + $0x178] sm:$0xff]  ;;  %v644_v47 = vld [vmem:[%s2728_s4 + $0x60] sm:$0xff] }
  0x19   : > { %695 = vmatpush.msra.mxu2 %v646_v38  ;;  %718 = vmatpush.msra.mxu3 %v662_v39  ;;  %v848_v45 = vld [vmem:[%s2731_s7 + $0x68] sm:$0xff]  ;;  %v660_v48 = vld [vmem:[%s2728_s4 + $0xe0] sm:$0xff]  ;;  %v678_v49 = vld [vmem:[%s2728_s4 + $0x170] sm:$0xff] }
  0x1a   : > { %531 = vmatpush.msra.mxu0 %v507_v10  ;;  %740 = vmatpush.msrb.mxu1 %v679_v44  ;;  %v847_v50 = vld [vmem:[%s2731_s7 + $0x60] sm:$0xff]  ;;  %v677_v51 = vld [vmem:[%s2728_s4 + $0x168] sm:$0xff]  ;;  %v643_v53 = vld [vmem:[%s2728_s4 + $0x58] sm:$0xff] }
  0x1b   : > { %696 = vmatpush.msra.mxu2 %v645_v42  ;;  %719 = vmatpush.msra.mxu3 %v661_v43  ;;  %v659_v54 = vld [vmem:[%s2728_s4 + $0xd8] sm:$0xff]  ;;  %v676_v57 = vld [vmem:[%s2728_s4 + $0x160] sm:$0xff]  ;;  %v642_v58 = vld [vmem:[%s2728_s4 + $0x50] sm:$0xff] }
  0x1c   : > { %532 = vmatpush.msra.mxu0 %v506_v11  ;;  %741 = vmatpush.msrb.mxu1 %v678_v49  ;;  %v846_v56 = vld [vmem:[%s2731_s7 + $0x58] sm:$0xff]  ;;  %v658_v59 = vld [vmem:[%s2728_s4 + $0xd0] sm:$0xff]  ;;  %v641_v0 = vld [vmem:[%s2728_s4 + $0x48] sm:$0xff] }
  0x1d   : > { %697 = vmatpush.msra.mxu2 %v644_v47  ;;  %720 = vmatpush.msra.mxu3 %v660_v48  ;;  %v845_v61 = vld [vmem:[%s2731_s7 + $0x50] sm:$0xff]  ;;  %v675_v62 = vld [vmem:[%s2728_s4 + $0x158] sm:$0xff]  ;;  %v657_v1 = vld [vmem:[%s2728_s4 + $0xc8] sm:$0xff] }
  0x1e   : > { %533 = vmatpush.msra.mxu0 %v505_v13  ;;  %742 = vmatpush.msrb.mxu1 %v677_v51  ;;  %v844_v2 = vld [vmem:[%s2731_s7 + $0x48] sm:$0xff]  ;;  %v674_v3 = vld [vmem:[%s2728_s4 + $0x150] sm:$0xff]  ;;  %v640_v5 = vld [vmem:[%s2728_s4 + $0x40] sm:$0xff] }
  0x1f   : > { %698 = vmatpush.msra.mxu2 %v643_v53  ;;  %721 = vmatpush.msra.mxu3 %v659_v54  ;;  %v656_v6 = vld [vmem:[%s2728_s4 + $0xc0] sm:$0xff]  ;;  %v673_v8 = vld [vmem:[%s2728_s4 + $0x148] sm:$0xff]  ;;  %v639_v10 = vld [vmem:[%s2728_s4 + $0x38] sm:$0xff] }
  0x20   : > { %534 = vmatpush.msra.mxu0 %v504_v14  ;;  %743 = vmatpush.msrb.mxu1 %v676_v57  ;;  %v843_v7 = vld [vmem:[%s2731_s7 + $0x40] sm:$0xff]  ;;  %v655_v11 = vld [vmem:[%s2728_s4 + $0xb8] sm:$0xff]  ;;  %v669_v35 = vld [vmem:[%s2728_s4 + $0x128] sm:$0xff] }
  0x21   : > { %699 = vmatpush.msra.mxu2 %v642_v58  ;;  %722 = vmatpush.msra.mxu3 %v658_v59  ;;  %v842_v14 = vld [vmem:[%s2731_s7 + $0x38] sm:$0xff]  ;;  %v634_v38 = vld [vmem:[%s2728_s4 + $0x10] sm:$0xff]  ;;  %v633_v44 = vld [vmem:[%s2728_s4 + $0x8] sm:$0xff] }
  0x22   : > { %535 = vmatpush.msra.mxu0 %v503_v15  ;;  %744 = vmatpush.msrb.mxu1 %v675_v62  ;;  %v650_v39 = vld [vmem:[%s2728_s4 + $0x90] sm:$0xff]  ;;  %v836_v47 = vld [vmem:[%s2731_s7 + $0x8] sm:$0xff]  ;;  %v632_v48 = vld [vmem:[%s2728_s4] sm:$0xff] }
  0x23   : > { %700 = vmatpush.msra.mxu2 %v641_v0  ;;  %723 = vmatpush.msra.mxu3 %v657_v1  ;;  %v648_v49 = vld [vmem:[%s2728_s4 + $0x80] sm:$0xff]  ;;  %v930_v54 = vld [vmem:[%s2732_s8 + $0x138] sm:$0xff] }
  0x24   : > { %536 = vmatpush.msra.mxu0 %v502_v16  ;;  %745 = vmatpush.msrb.mxu1 %v674_v3  ;;  %v638_v16 = vld [vmem:[%s2728_s4 + $0x30] sm:$0xff]  ;;  %v835_v51 = vld [vmem:[%s2731_s7] sm:$0xff]  ;;  %v926_v58 = vld [vmem:[%s2732_s8 + $0x118] sm:$0xff] }
  0x25   : > { %701 = vmatpush.msra.mxu2 %v640_v5  ;;  %724 = vmatpush.msra.mxu3 %v656_v6  ;;  %v664_v53 = vld [vmem:[%s2728_s4 + $0x100] sm:$0xff]  ;;  %v1409_v23 = vld [vmem:[%s2737_s13 + $0x98] sm:$0xff] }
  0x26   : > { %537 = vmatpush.msra.mxu0 %v501_v17  ;;  %746 = vmatpush.msrb.mxu1 %v673_v8  ;;  %v654_v17 = vld [vmem:[%s2728_s4 + $0xb0] sm:$0xff]  ;;  %v927_v57 = vld [vmem:[%s2732_s8 + $0x120] sm:$0xff] }
  0x27   : > { %702 = vmatpush.msra.mxu2 %v639_v10  ;;  %725 = vmatpush.msra.mxu3 %v655_v11 }
  0x28   : > { %538 = vmatpush.msra.mxu0 %v500_v18  ;;  %v672_v18 = vld [vmem:[%s2728_s4 + $0x140] sm:$0xff] }
  0x29   : > { %703 = vmatpush.msra.mxu2 %v638_v16  ;;  %726 = vmatpush.msra.mxu3 %v654_v17  ;;  %v924_v16 = vld [vmem:[%s2732_s8 + $0x108] sm:$0xff]  ;;  %v923_v17 = vld [vmem:[%s2732_s8 + $0x100] sm:$0xff] }
  0x2a   : > { %539 = vmatpush.msra.mxu0 %v499_v19  ;;  %v841_v19 = vld [vmem:[%s2731_s7 + $0x30] sm:$0xff]  ;;  %747 = vmatpush.msrb.mxu1 %v672_v18  ;;  %v866_v18 = vld [vmem:[%s2731_s7 + $0xf8] sm:$0xff] }
  0x2b   : > { %540 = vmatmul.f32.vlgmr.msra.gmra.mxu0 %v495_v20  ;;  %v637_v20 = vld [vmem:[%s2728_s4 + $0x28] sm:$0xff] }
  0x2c   : > { %771 = vmatpush.msrb.mxu0 %v687_v22  ;;  %v671_v22 = vld [vmem:[%s2728_s4 + $0x138] sm:$0xff]  ;;  %704 = vmatpush.msra.mxu2 %v637_v20  ;;  %v864_v20 = vld [vmem:[%s2731_s7 + $0xe8] sm:$0xff] }
  0x2d   : > { %748 = vmatpush.msrb.mxu1 %v671_v22  ;;  %v862_v22 = vld [vmem:[%s2731_s7 + $0xd8] sm:$0xff] }
  0x2e   : > { %772 = vmatpush.msrb.mxu0 %v686_v24  ;;  %v840_v24 = vld [vmem:[%s2731_s7 + $0x28] sm:$0xff] }
  0x30   : > { %773 = vmatpush.msrb.mxu0 %v685_v25  ;;  %v636_v25 = vld [vmem:[%s2728_s4 + $0x20] sm:$0xff] }
  0x31   : > { %705 = vmatpush.msra.mxu2 %v636_v25  ;;  %v860_v25 = vld [vmem:[%s2731_s7 + $0xc8] sm:$0xff] }
  0x32   : > { %774 = vmatpush.msrb.mxu0 %v684_v26  ;;  %v652_v26 = vld [vmem:[%s2728_s4 + $0xa0] sm:$0xff] }
  0x33   : > { %543 = vmatmul.f32.gmra.mxu0 %v497_v21  ;;  %v653_v21 = vld [vmem:[%s2728_s4 + $0xa8] sm:$0xff] }
  0x34   : > { %775 = vmatpush.msrb.mxu0 %v683_v27  ;;  %727 = vmatpush.msra.mxu3 %v653_v21  ;;  %v670_v27 = vld [vmem:[%s2728_s4 + $0x130] sm:$0xff]  ;;  %v863_v21 = vld [vmem:[%s2731_s7 + $0xe0] sm:$0xff] }
  0x35   : > { %749 = vmatpush.msrb.mxu1 %v670_v27  ;;  %v858_v27 = vld [vmem:[%s2731_s7 + $0xb8] sm:$0xff] }
  0x36   : > { %776 = vmatpush.msrb.mxu0 %v682_v28  ;;  %v839_v28 = vld [vmem:[%s2731_s7 + $0x20] sm:$0xff]  ;;  %728 = vmatpush.msra.mxu3 %v652_v26 }
  0x37   : > { %750 = vmatpush.msrb.mxu1 %v669_v35  ;;  %v859_v26 = vld [vmem:[%s2731_s7 + $0xc0] sm:$0xff] }
  0x38   : > { %777 = vmatpush.msrb.mxu0 %v681_v29  ;;  %v635_v29 = vld [vmem:[%s2728_s4 + $0x18] sm:$0xff]  ;;  %v851_v35 = vld [vmem:[%s2731_s7 + $0x80] sm:$0xff] }
  0x39   : > { %706 = vmatpush.msra.mxu2 %v635_v29  ;;  %v856_v29 = vld [vmem:[%s2731_s7 + $0xa8] sm:$0xff] }
  0x3a   : > { %778 = vmatpush.msrb.mxu0 %v680_v30  ;;  %v651_v30 = vld [vmem:[%s2728_s4 + $0x98] sm:$0xff] }
  0x3b   : > { %729 = vmatpush.msra.mxu3 %v651_v30  ;;  %707 = vmatpush.msra.mxu2 %v634_v38  ;;  %v855_v30 = vld [vmem:[%s2731_s7 + $0xa0] sm:$0xff] }
  0x3c   : > { %1006 = vmatpush.msra.mxu0 %v850_v36 }
  0x3d   : > { %730 = vmatpush.msra.mxu3 %v650_v39  ;;  %708 = vmatpush.msra.mxu2 %v633_v44 }
  0x3e   : > { %1007 = vmatpush.msra.mxu0 %v849_v40  ;;  %v668_v40 = vld [vmem:[%s2728_s4 + $0x120] sm:$0xff] }
  0x3f   : > { %751 = vmatpush.msrb.mxu1 %v668_v40  ;;  %709 = vmatpush.msra.mxu2 %v632_v48 }
  0x40   : > { %1008 = vmatpush.msra.mxu0 %v848_v45  ;;  %v649_v45 = vld [vmem:[%s2728_s4 + $0x88] sm:$0xff] }
  0x41   : > { %731 = vmatpush.msra.mxu3 %v649_v45  ;;  %v1608_v45 = vld [vmem:[%s2730_s6] ss:$0 sm:$0xff] }
  0x42   : > { %1009 = vmatpush.msra.mxu0 %v847_v50  ;;  %v666_v50 = vld [vmem:[%s2728_s4 + $0x110] sm:$0xff] }
  0x43   : > { %732 = vmatpush.msra.mxu3 %v648_v49 }
  0x44   : > { %1010 = vmatpush.msra.mxu0 %v846_v56  ;;  %v928_v56 = vld [vmem:[%s2732_s8 + $0x128] sm:$0xff] }
  0x46   : > { %1011 = vmatpush.msra.mxu0 %v845_v61 }
  0x48   : > { %1012 = vmatpush.msra.mxu0 %v844_v2 }
  0x4a   : > { %1013 = vmatpush.msra.mxu0 %v843_v7 }
  0x4c   : > { %1014 = vmatpush.msra.mxu0 %v842_v14 }
  0x4e   : > { %1015 = vmatpush.msra.mxu0 %v841_v19  ;;  %v865_v19 = vld [vmem:[%s2731_s7 + $0xf0] sm:$0xff] }
  0x50   : > { %1016 = vmatpush.msra.mxu0 %v840_v24  ;;  %v861_v24 = vld [vmem:[%s2731_s7 + $0xd0] sm:$0xff] }
  0x52   : > { %1017 = vmatpush.msra.mxu0 %v839_v28  ;;  %v857_v28 = vld [vmem:[%s2731_s7 + $0xb0] sm:$0xff] }
  0x8d   : > { %v564_v31 = vpop.f32.mrf.mxu1 }
  0x95   : > { %v567_v55 = vpop.f32.mrf.mxu1 }
  0xa8   : > { %v541_v37 = vpop.f32.mrf.mxu0 }
  0xa9   : > { %v565_v41 = vadd.f32 %v564_v31, %v541_v37  ;;  %v838_v37 = vld [vmem:[%s2731_s7 + $0x18] sm:$0xff] }
  0xaa   : > { %1018 = vmatpush.msra.mxu0 %v838_v37 }
  0xab   : > { %v574_v46 = vmul.f32 %v1605_v32, %v565_v41  ;;  %v837_v41 = vld [vmem:[%s2731_s7 + $0x10] sm:$0xff] }
  0xac   : > { %1019 = vmatpush.msra.mxu0 %v837_v41 }
  0xad   : > { %v580_v52 = vadd.f32 %v1808_v33, %v574_v46  ;;  %v667_v46 = vld [vmem:[%s2728_s4 + $0x118] sm:$0xff] }
  0xae   : > { %752 = vmatpush.msrb.mxu1 %v667_v46  ;;  %1020 = vmatpush.msra.mxu0 %v836_v47 }
  0xaf   : > { %583 = vst.msk [vmem:[#allocation2 + $0x3] sm:$0xff] %vm582_vm2, %v580_v52  ;;  %v665_v52 = vld [vmem:[%s2728_s4 + $0x108] sm:$0xff] }
  0xb0   : > { %v544_v60 = vpop.f32.mrf.mxu0  ;;  %753 = vmatpush.msrb.mxu1 %v666_v50  ;;  %1021 = vmatpush.msra.mxu0 %v835_v51 }
  0xb1   : > { %v568_v63 = vadd.f32 %v567_v55, %v544_v60  ;;  %v929_v55 = vld [vmem:[%s2732_s8 + $0x130] sm:$0xff] }
  0xb2   : > { %754 = vmatpush.msrb.mxu1 %v665_v52 }
  0xb3   : > { %v575_v4 = vmul.f32 %v1605_v32, %v568_v63 }
  0xb4   : > { %755 = vmatpush.msrb.mxu1 %v664_v53 }
  0xb5   : > { %v581_v9 = vadd.f32 %v1808_v33, %v575_v4 }
  0xb6   : > { %v590_v12 = vld [vmem:[#allocation2 + $0x1] sm:$0xff]  ;;  %991 = vmatpush.msra.mxu1 %v930_v54 }
  0xb7   : > { %v594_v13 = vld [vmem:[#allocation2 + $0x3] sm:$0xff]  ;;  %584 = vst.msk [vmem:[#allocation2 + $0xb] sm:$0xff] %vm582_vm2, %v581_v9 }
  0xb8   : > { %v1585_v15 = vpack.i.bf16 %v594_v13, %v590_v12  ;;  %992 = vmatpush.msra.mxu1 %v929_v55  ;;  %v588_v62 = vld [vmem:[#allocation2] sm:$0xff] }
  0xb9   : > { %v592_v63 = vld [vmem:[#allocation2 + $0x2] sm:$0xff] }
  0xba   : > { %1586 = vrot.lane.b32.xlu0 %v1585_v15, %s1621_s28  ;;  %993 = vmatpush.msra.mxu1 %v928_v56  ;;  %v925_v15 = vld [vmem:[%s2732_s8 + $0x110] sm:$0xff] }
  0xbc   : > { %994 = vmatpush.msra.mxu1 %v927_v57 }
  0xbe   : > { %v1959_v31 = vld [vmem:[#allocation2 + $0x6] sm:$0xff]  ;;  %v1983_v42 = vld [vmem:[#allocation2 + $0xe] sm:$0xff]  ;;  %995 = vmatpush.msra.mxu1 %v926_v58 }
  0xbf   : > { %v598_v32 = vld [vmem:[#allocation2 + $0x5] sm:$0xff]  ;;  %1543 = vmatmul.msk.f32.vlgmr.msrb.gmra.mxu0 %vm582_vm2, %v1959_v31  ;;  %v599_v43 = vld [vmem:[#allocation2 + $0xd] sm:$0xff] }
  0xc0   : > { %v591_v33 = vld [vmem:[#allocation2 + $0x9] sm:$0xff]  ;;  %620 = vrot.lane.b32.xlu1 %v598_v32, %s1621_s28  ;;  %996 = vmatpush.msra.mxu1 %v925_v15 }
  0xc1   : > { %v595_v34 = vld [vmem:[#allocation2 + $0xb] sm:$0xff] }
  0xc2   : > { %v1590_v36 = vpack.i.bf16 %v595_v34, %v591_v33  ;;  %v596_v3 = vld [vmem:[#allocation2 + $0x4] sm:$0xff]  ;;  %v597_v13 = vld [vmem:[#allocation2 + $0xc] sm:$0xff]  ;;  %997 = vmatpush.msra.mxu1 %v924_v16  ;;  %v852_v34 = vld [vmem:[%s2731_s7 + $0x88] sm:$0xff] }
  0xc3   : > { %v589_v8 = vld [vmem:[#allocation2 + $0x8] sm:$0xff]  ;;  %v853_v33 = vld [vmem:[%s2731_s7 + $0x90] sm:$0xff] }
  0xc4   : > { %1591 = vrot.lane.b32.xlu0 %v1590_v36, %s1621_s28  ;;  %v593_v9 = vld [vmem:[#allocation2 + $0xa] sm:$0xff]  ;;  %998 = vmatpush.msra.mxu1 %v923_v17  ;;  %v1223_v17 = vld [vmem:[%s2736_s12 + $0x110] sm:$0xff] }
  0xc5   : > { %v854_v32 = vld [vmem:[%s2731_s7 + $0x98] sm:$0xff] }
  0xc7   : > { %1544 = vmatmul.msk.f32.gmra.mxu0 %vm582_vm2, %v1983_v42 }
  0xc8   : > { %622 = vrot.lane.b32.xlu1 %v599_v43, %s1621_s28  ;;  %v1607_v43 = vld [vmem:[%s2729_s5] ss:$0 sm:$0xff] }
 0x12c   : > { %v1587_v59 = vpop.permute.xlu0 %1586 }
 0x12d   : > { %v1589_v60 = vunpack.i.h.bf16 %v1587_v59  ;;  %v1588_v61 = vunpack.i.l.bf16 %v1587_v59  ;;  %v1228_v59 = vld [vmem:[%s2736_s12 + $0x138] sm:$0xff] }
 0x12f   : > { %v2034_v0 = vsel %vm582_vm2, %v588_v62, %v1588_v61  ;;  %v2037_v1 = vsel %vm582_vm2, %v592_v63, %v1589_v60 }
 0x130   : > { %710 = vmatmul.f32.vlgmr.msra.gmra.mxu2 %v2034_v0  ;;  %733 = vmatmul.f32.vlgmr.msra.gmra.mxu3 %v2037_v1 }
 0x131   : > { %1022 = vmatmul.f32.vlgmr.msra.gmra.mxu0 %v2034_v0 }
 0x132   : > { %v621_v2 = vpop.permute.xlu1 %620 }
 0x133   : > { %v2043_v4 = vsel %vm582_vm2, %v596_v3, %v621_v2  ;;  %v1227_v2 = vld [vmem:[%s2736_s12 + $0x130] sm:$0xff]  ;;  %v906_v3 = vld [vmem:[%s2732_s8 + $0x78] sm:$0xff] }
 0x134   : > { %756 = vmatmul.f32.vlgmr.msrb.gmra.mxu1 %v2043_v4  ;;  %937 = vmatpush.msrb.mxu2 %v906_v3  ;;  %v914_v3 = vld [vmem:[%s2732_s8 + $0xb8] sm:$0xff] }
 0x135   : > { %1029 = vmatpush.msrb.mxu1 %v866_v18  ;;  %v903_v18 = vld [vmem:[%s2732_s8 + $0x60] sm:$0xff] }
 0x136   : > { %v1592_v5 = vpop.permute.xlu0 %1591 }
 0x137   : > { %v1594_v6 = vunpack.i.h.bf16 %v1592_v5  ;;  %v1593_v7 = vunpack.i.l.bf16 %v1592_v5  ;;  %1030 = vmatpush.msrb.mxu1 %v865_v19  ;;  %v1226_v5 = vld [vmem:[%s2736_s12 + $0x128] sm:$0xff]  ;;  %v902_v19 = vld [vmem:[%s2732_s8 + $0x58] sm:$0xff] }
 0x139   : > { %v2047_v10 = vsel %vm582_vm2, %v589_v8, %v1593_v7  ;;  %v2050_v11 = vsel %vm582_vm2, %v593_v9, %v1594_v6  ;;  %1031 = vmatpush.msrb.mxu1 %v864_v20  ;;  %v905_v6 = vld [vmem:[%s2732_s8 + $0x70] sm:$0xff]  ;;  %v1225_v7 = vld [vmem:[%s2736_s12 + $0x120] sm:$0xff]  ;;  %v1222_v20 = vld [vmem:[%s2736_s12 + $0x108] sm:$0xff] }
 0x13a   : > { %713 = vmatmul.f32.gmra.mxu2 %v2047_v10  ;;  %736 = vmatmul.f32.gmra.mxu3 %v2050_v11  ;;  %v623_v12 = vpop.permute.xlu1 %622 }
 0x13b   : > { %1025 = vmatmul.f32.gmra.mxu0 %v2047_v10  ;;  %v2056_v14 = vsel %vm582_vm2, %v597_v13, %v623_v12  ;;  %1032 = vmatpush.msrb.mxu1 %v863_v21  ;;  %v904_v12 = vld [vmem:[%s2732_s8 + $0x68] sm:$0xff]  ;;  %v1224_v13 = vld [vmem:[%s2736_s12 + $0x118] sm:$0xff]  ;;  %v901_v21 = vld [vmem:[%s2732_s8 + $0x50] sm:$0xff] }
 0x13c   : > { %759 = vmatmul.f32.gmra.mxu1 %v2056_v14  ;;  %v780_v40 = vpop.f32.mrf.mxu0  ;;  %938 = vmatpush.msrb.mxu2 %v905_v6  ;;  %v1195_v6 = vld [vmem:[%s2736_s12 + $0x30] sm:$0xff] }
 0x13d   : > { %1033 = vmatpush.msrb.mxu1 %v862_v22  ;;  %v1221_v22 = vld [vmem:[%s2736_s12 + $0x100] sm:$0xff] }
 0x13e   : > { %939 = vmatpush.msrb.mxu2 %v904_v12  ;;  %v1194_v12 = vld [vmem:[%s2736_s12 + $0x28] sm:$0xff] }
 0x13f   : > { %1034 = vmatpush.msrb.mxu1 %v861_v24  ;;  %v900_v24 = vld [vmem:[%s2732_s8 + $0x48] sm:$0xff] }
 0x140   : > { %940 = vmatpush.msrb.mxu2 %v903_v18  ;;  %v1193_v18 = vld [vmem:[%s2736_s12 + $0x20] sm:$0xff] }
 0x141   : > { %1035 = vmatpush.msrb.mxu1 %v860_v25  ;;  %v1164_v25 = vld [vmem:[%s2735_s11 + $0xf8] sm:$0xff] }
 0x142   : > { %941 = vmatpush.msrb.mxu2 %v902_v19  ;;  %v1151_v19 = vld [vmem:[%s2735_s11 + $0x90] sm:$0xff] }
 0x143   : > { %1036 = vmatpush.msrb.mxu1 %v859_v26  ;;  %v1163_v26 = vld [vmem:[%s2735_s11 + $0xf0] sm:$0xff] }
 0x144   : > { %v783_v54 = vpop.f32.mrf.mxu0  ;;  %942 = vmatpush.msrb.mxu2 %v901_v21  ;;  %v878_v21 = vld [vmem:[%s2731_s7 + $0x158] sm:$0xff] }
 0x145   : > { %1037 = vmatpush.msrb.mxu1 %v858_v27  ;;  %v899_v27 = vld [vmem:[%s2732_s8 + $0x40] sm:$0xff] }
 0x146   : > { %943 = vmatpush.msrb.mxu2 %v900_v24  ;;  %v910_v24 = vld [vmem:[%s2732_s8 + $0x98] sm:$0xff] }
 0x147   : > { %1038 = vmatpush.msrb.mxu1 %v857_v28  ;;  %v1204_v28 = vld [vmem:[%s2736_s12 + $0x78] sm:$0xff] }
 0x148   : > { %944 = vmatpush.msrb.mxu2 %v899_v27  ;;  %1229 = vmatpush.msrb.mxu0 %v1204_v28  ;;  %v1149_v27 = vld [vmem:[%s2735_s11 + $0x80] sm:$0xff]  ;;  %v909_v28 = vld [vmem:[%s2732_s8 + $0x90] sm:$0xff] }
 0x149   : > { %1039 = vmatpush.msrb.mxu1 %v856_v29  ;;  %v898_v29 = vld [vmem:[%s2732_s8 + $0x38] sm:$0xff] }
 0x14a   : > { %945 = vmatpush.msrb.mxu2 %v898_v29  ;;  %v876_v29 = vld [vmem:[%s2731_s7 + $0x148] sm:$0xff] }
 0x14b   : > { %1040 = vmatpush.msrb.mxu1 %v855_v30  ;;  %v922_v30 = vld [vmem:[%s2732_s8 + $0xf8] sm:$0xff] }
 0x14c   : > { %960 = vmatpush.msrb.mxu3 %v922_v30  ;;  %v1190_v30 = vld [vmem:[%s2736_s12 + $0x8] sm:$0xff] }
 0x14d   : > { %1041 = vmatpush.msrb.mxu1 %v854_v32  ;;  %v1203_v32 = vld [vmem:[%s2736_s12 + $0x70] sm:$0xff] }
 0x14e   : > { %1230 = vmatpush.msrb.mxu0 %v1203_v32  ;;  %v908_v32 = vld [vmem:[%s2732_s8 + $0x88] sm:$0xff] }
 0x14f   : > { %1042 = vmatpush.msrb.mxu1 %v853_v33  ;;  %v1162_v33 = vld [vmem:[%s2735_s11 + $0xe8] sm:$0xff] }
 0x151   : > { %1043 = vmatpush.msrb.mxu1 %v852_v34  ;;  %v897_v34 = vld [vmem:[%s2732_s8 + $0x30] sm:$0xff] }
 0x152   : > { %946 = vmatpush.msrb.mxu2 %v897_v34  ;;  %v1189_v34 = vld [vmem:[%s2736_s12] sm:$0xff] }
 0x153   : > { %1044 = vmatpush.msrb.mxu1 %v851_v35  ;;  %v921_v35 = vld [vmem:[%s2732_s8 + $0xf0] sm:$0xff] }
 0x154   : > { %961 = vmatpush.msrb.mxu3 %v921_v35  ;;  %v907_v35 = vld [vmem:[%s2732_s8 + $0x80] sm:$0xff] }
 0x1b1   : > { %v757_v38 = vpop.f32.mrf.mxu1 }
 0x1b3   : > { %v711_v36 = vpop.f32.mrf.mxu2  ;;  %v734_v37 = vpop.f32.mrf.mxu3 }
 0x1b4   : > { %v735_v39 = vadd.f32 %v734_v37, %v711_v36  ;;  %v1202_v36 = vld [vmem:[%s2736_s12 + $0x68] sm:$0xff] }
 0x1b5   : > { %v920_v37 = vld [vmem:[%s2732_s8 + $0xe8] sm:$0xff]  ;;  %1231 = vmatpush.msrb.mxu0 %v1202_v36  ;;  %v1180_v36 = vld [vmem:[%s2735_s11 + $0x178] sm:$0xff] }
 0x1b6   : > { %v758_v41 = vadd.f32 %v757_v38, %v735_v39  ;;  %v1161_v38 = vld [vmem:[%s2735_s11 + $0xe0] sm:$0xff]  ;;  %v896_v39 = vld [vmem:[%s2732_s8 + $0x28] sm:$0xff]  ;;  %962 = vmatpush.msrb.mxu3 %v920_v37  ;;  %v874_v37 = vld [vmem:[%s2731_s7 + $0x138] sm:$0xff] }
 0x1b7   : > { %947 = vmatpush.msrb.mxu2 %v896_v39  ;;  %v873_v39 = vld [vmem:[%s2731_s7 + $0x130] sm:$0xff] }
 0x1b8   : > { %v781_v44 = vadd.f32 %v780_v40, %v758_v41  ;;  %v1201_v40 = vld [vmem:[%s2736_s12 + $0x60] sm:$0xff]  ;;  %v1160_v41 = vld [vmem:[%s2735_s11 + $0xd8] sm:$0xff] }
 0x1b9   : > { %v760_v52 = vpop.f32.mrf.mxu1  ;;  %1232 = vmatpush.msrb.mxu0 %v1201_v40  ;;  %v889_v40 = vld [vmem:[%s2731_s7 + $0x1b0] sm:$0xff] }
 0x1ba   : > { %v790_v46 = vmul.f32 %v1607_v43, %v781_v44  ;;  %v895_v44 = vld [vmem:[%s2732_s8 + $0x20] sm:$0xff] }
 0x1bb   : > { %948 = vmatpush.msrb.mxu2 %v895_v44  ;;  %v888_v44 = vld [vmem:[%s2731_s7 + $0x1a8] sm:$0xff] }
 0x1bc   : > { %v796_v47 = vadd.f32 %v1608_v45, %v790_v46  ;;  %v1200_v46 = vld [vmem:[%s2736_s12 + $0x58] sm:$0xff] }
 0x1bd   : > { %v714_v48 = vpop.f32.mrf.mxu2  ;;  %v737_v49 = vpop.f32.mrf.mxu3  ;;  %1233 = vmatpush.msrb.mxu0 %v1200_v46  ;;  %v871_v46 = vld [vmem:[%s2731_s7 + $0x120] sm:$0xff] }
 0x1be   : > { %v738_v50 = vadd.f32 %v737_v49, %v714_v48  ;;  %v798_v51 = vmax.f32 %v796_v47, 0.0  ;;  %v894_v47 = vld [vmem:[%s2732_s8 + $0x18] sm:$0xff]  ;;  %v1199_v49 = vld [vmem:[%s2736_s12 + $0x50] sm:$0xff] }
 0x1bf   : > { %v918_v48 = vld [vmem:[%s2732_s8 + $0xd8] sm:$0xff]  ;;  %949 = vmatpush.msrb.mxu2 %v894_v47  ;;  %1234 = vmatpush.msrb.mxu0 %v1199_v49  ;;  %v887_v47 = vld [vmem:[%s2731_s7 + $0x1a0] sm:$0xff] }
 0x1c0   : > { %v761_v53 = vadd.f32 %v760_v52, %v738_v50  ;;  %800 = vst.msk [vmem:[#allocation3 + $0x2] sm:$0xff] %vm582_vm2, %v798_v51  ;;  %v1158_v50 = vld [vmem:[%s2735_s11 + $0xc8] sm:$0xff]  ;;  %v893_v51 = vld [vmem:[%s2732_s8 + $0x10] sm:$0xff]  ;;  %v886_v49 = vld [vmem:[%s2731_s7 + $0x198] sm:$0xff] }
 0x1c1   : > { %v917_v52 = vld [vmem:[%s2732_s8 + $0xd0] sm:$0xff]  ;;  %950 = vmatpush.msrb.mxu2 %v893_v51 }
 0x1c2   : > { %v784_v55 = vadd.f32 %v783_v54, %v761_v53  ;;  %v1198_v53 = vld [vmem:[%s2736_s12 + $0x48] sm:$0xff]  ;;  %v1157_v54 = vld [vmem:[%s2735_s11 + $0xc0] sm:$0xff]  ;;  %v869_v51 = vld [vmem:[%s2731_s7 + $0x110] sm:$0xff] }
 0x1c3   : > { %1235 = vmatpush.msrb.mxu0 %v1198_v53  ;;  %v1174_v53 = vld [vmem:[%s2735_s11 + $0x148] sm:$0xff] }
 0x1c4   : > { %v791_v56 = vmul.f32 %v1607_v43, %v784_v55  ;;  %v1159_v43 = vld [vmem:[%s2735_s11 + $0xd0] sm:$0xff]  ;;  %v892_v55 = vld [vmem:[%s2732_s8 + $0x8] sm:$0xff] }
 0x1c5   : > { %951 = vmatpush.msrb.mxu2 %v892_v55  ;;  %v884_v55 = vld [vmem:[%s2731_s7 + $0x188] sm:$0xff] }
 0x1c6   : > { %v797_v57 = vadd.f32 %v1608_v45, %v791_v56  ;;  %v919_v45 = vld [vmem:[%s2732_s8 + $0xe0] sm:$0xff]  ;;  %v916_v56 = vld [vmem:[%s2732_s8 + $0xc8] sm:$0xff] }
 0x1c7   : > { %v807_v61 = vld [vmem:[#allocation3 + $0x1] sm:$0xff]  ;;  %963 = vmatpush.msrb.mxu3 %v919_v45  ;;  %v1177_v45 = vld [vmem:[%s2735_s11 + $0x160] sm:$0xff] }
 0x1c8   : > { %v799_v58 = vmax.f32 %v797_v57, 0.0  ;;  %v1156_v57 = vld [vmem:[%s2735_s11 + $0xb8] sm:$0xff] }
 0x1c9   : > { %964 = vmatpush.msrb.mxu3 %v918_v48  ;;  %v1176_v48 = vld [vmem:[%s2735_s11 + $0x158] sm:$0xff] }
 0x1ca   : > { %801 = vst.msk [vmem:[#allocation3 + $0xa] sm:$0xff] %vm582_vm2, %v799_v58  ;;  %v1197_v58 = vld [vmem:[%s2736_s12 + $0x40] sm:$0xff] }
 0x1cb   : > { %965 = vmatpush.msrb.mxu3 %v917_v52  ;;  %1236 = vmatpush.msrb.mxu0 %v1197_v58  ;;  %v885_v52 = vld [vmem:[%s2731_s7 + $0x190] sm:$0xff]  ;;  %v883_v58 = vld [vmem:[%s2731_s7 + $0x180] sm:$0xff] }
 0x1cd   : > { %966 = vmatpush.msrb.mxu3 %v916_v56  ;;  %v1173_v56 = vld [vmem:[%s2735_s11 + $0x140] sm:$0xff] }
 0x1d1   : > { %v2129_v60 = vld [vmem:[#allocation3 + $0x4] sm:$0xff]  ;;  %v2155_v15 = vld [vmem:[#allocation3 + $0xc] sm:$0xff] }
 0x1d2   : > { %v811_v62 = vld [vmem:[#allocation3 + $0x3] sm:$0xff]  ;;  %1545 = vmatmul.msk.f32.vlgmr.msra.gmra.mxu1 %vm582_vm2, %v2129_v60  ;;  %v812_v9 = vld [vmem:[#allocation3 + $0xb] sm:$0xff] }
 0x1d3   : > { %v1595_v63 = vpack.i.bf16 %v811_v62, %v807_v61  ;;  %1283 = vmatpush.msra.mxu1 %v1228_v59  ;;  %v808_v8 = vld [vmem:[#allocation3 + $0x9] sm:$0xff]  ;;  %v891_v59 = vld [vmem:[%s2732_s8] sm:$0xff] }
 0x1d4   : > { %v1600_v16 = vpack.i.bf16 %v812_v9, %v808_v8  ;;  %v915_v61 = vld [vmem:[%s2732_s8 + $0xc0] sm:$0xff]  ;;  %v1155_v62 = vld [vmem:[%s2735_s11 + $0xb0] sm:$0xff]  ;;  %952 = vmatpush.msrb.mxu2 %v891_v59  ;;  %v880_v9 = vld [vmem:[%s2731_s7 + $0x168] sm:$0xff] }
 0x1d5   : > { %1596 = vrot.lane.b32.xlu2 %v1595_v63, %s1621_s28  ;;  %1284 = vmatpush.msra.mxu1 %v1227_v2  ;;  %v882_v63 = vld [vmem:[%s2731_s7 + $0x178] sm:$0xff]  ;;  %v1153_v8 = vld [vmem:[%s2735_s11 + $0xa0] sm:$0xff] }
 0x1d6   : > { %v1196_v2 = vld [vmem:[%s2736_s12 + $0x38] sm:$0xff]  ;;  %967 = vmatpush.msrb.mxu3 %v915_v61  ;;  %1052 = vmatpush.msra.mxu2 %v882_v63  ;;  %v1171_v61 = vld [vmem:[%s2735_s11 + $0x130] sm:$0xff]  ;;  %v1169_v63 = vld [vmem:[%s2735_s11 + $0x120] sm:$0xff] }
 0x1d7   : > { %1285 = vmatpush.msra.mxu1 %v1226_v5  ;;  %v881_v5 = vld [vmem:[%s2731_s7 + $0x170] sm:$0xff]  ;;  %1237 = vmatpush.msrb.mxu0 %v1196_v2  ;;  %v1172_v59 = vld [vmem:[%s2735_s11 + $0x138] sm:$0xff] }
 0x1d8   : > { %968 = vmatpush.msrb.mxu3 %v914_v3  ;;  %1053 = vmatpush.msra.mxu2 %v881_v5  ;;  %v1168_v2 = vld [vmem:[%s2735_s11 + $0x118] sm:$0xff]  ;;  %v1167_v3 = vld [vmem:[%s2735_s11 + $0x110] sm:$0xff]  ;;  %v1165_v5 = vld [vmem:[%s2735_s11 + $0x100] sm:$0xff] }
 0x1d9   : > { %1286 = vmatpush.msra.mxu1 %v1225_v7  ;;  %v913_v7 = vld [vmem:[%s2732_s8 + $0xb0] sm:$0xff]  ;;  %1238 = vmatpush.msrb.mxu0 %v1195_v6 }
 0x1da   : > { %1546 = vmatmul.msk.f32.gmra.mxu1 %vm582_vm2, %v2155_v15  ;;  %969 = vmatpush.msrb.mxu3 %v913_v7 }
 0x1db   : > { %1287 = vmatpush.msra.mxu1 %v1224_v13  ;;  %v1152_v13 = vld [vmem:[%s2735_s11 + $0x98] sm:$0xff]  ;;  %1054 = vmatpush.msra.mxu2 %v880_v9  ;;  %v805_v9 = vld [vmem:[#allocation3] sm:$0xff] }
 0x1dc   : > { %1239 = vmatpush.msrb.mxu0 %v1194_v12  ;;  %v809_v12 = vld [vmem:[#allocation3 + $0x2] sm:$0xff] }
 0x1dd   : > { %1601 = vrot.lane.b32.xlu2 %v1600_v16, %s1621_s28  ;;  %1288 = vmatpush.msra.mxu1 %v1223_v17  ;;  %v912_v16 = vld [vmem:[%s2732_s8 + $0xa8] sm:$0xff]  ;;  %v879_v17 = vld [vmem:[%s2731_s7 + $0x160] sm:$0xff] }
 0x1de   : > { %970 = vmatpush.msrb.mxu3 %v912_v16  ;;  %1055 = vmatpush.msra.mxu2 %v879_v17 }
 0x1df   : > { %1289 = vmatpush.msra.mxu1 %v1222_v20  ;;  %v911_v20 = vld [vmem:[%s2732_s8 + $0xa0] sm:$0xff]  ;;  %1240 = vmatpush.msrb.mxu0 %v1193_v18  ;;  %v1148_v18 = vld [vmem:[%s2735_s11 + $0x78] sm:$0xff] }
 0x1e0   : > { %971 = vmatpush.msrb.mxu3 %v911_v20  ;;  %1056 = vmatpush.msra.mxu2 %v878_v21  ;;  %v1147_v20 = vld [vmem:[%s2735_s11 + $0x70] sm:$0xff]  ;;  %v1218_v21 = vld [vmem:[%s2736_s12 + $0xe8] sm:$0xff] }
 0x1e1   : > { %1290 = vmatpush.msra.mxu1 %v1221_v22  ;;  %v1192_v22 = vld [vmem:[%s2736_s12 + $0x18] sm:$0xff] }
 0x1e2   : > { %1045 = vmatmul.f32.vlgmr.msrb.gmra.mxu1 %v2037_v1  ;;  %1241 = vmatpush.msrb.mxu0 %v1192_v22  ;;  %v1146_v22 = vld [vmem:[%s2735_s11 + $0x68] sm:$0xff] }
 0x1e3   : > { %1321 = vmatpush.msrb.mxu1 %v1164_v25  ;;  %v877_v25 = vld [vmem:[%s2731_s7 + $0x150] sm:$0xff]  ;;  %972 = vmatpush.msrb.mxu3 %v910_v24  ;;  %v1217_v24 = vld [vmem:[%s2736_s12 + $0xe0] sm:$0xff] }
 0x1e4   : > { %1057 = vmatpush.msra.mxu2 %v877_v25 }
 0x1e5   : > { %1322 = vmatpush.msrb.mxu1 %v1163_v26  ;;  %v1191_v26 = vld [vmem:[%s2736_s12 + $0x10] sm:$0xff]  ;;  %973 = vmatpush.msrb.mxu3 %v909_v28 }
 0x1e6   : > { %1242 = vmatpush.msrb.mxu0 %v1191_v26  ;;  %1058 = vmatpush.msra.mxu2 %v876_v29  ;;  %v806_v28 = vld [vmem:[#allocation3 + $0x8] sm:$0xff] }
 0x1e7   : > { %1323 = vmatpush.msrb.mxu1 %v1162_v33  ;;  %v875_v33 = vld [vmem:[%s2731_s7 + $0x140] sm:$0xff]  ;;  %974 = vmatpush.msrb.mxu3 %v908_v32  ;;  %v810_v29 = vld [vmem:[#allocation3 + $0xa] sm:$0xff] }
 0x1e8   : > { %1243 = vmatpush.msrb.mxu0 %v1190_v30  ;;  %1059 = vmatpush.msra.mxu2 %v875_v33  ;;  %v1216_v33 = vld [vmem:[%s2736_s12 + $0xd8] sm:$0xff] }
 0x1e9   : > { %1324 = vmatpush.msrb.mxu1 %v1161_v38  ;;  %975 = vmatpush.msrb.mxu3 %v907_v35  ;;  %v1179_v38 = vld [vmem:[%s2735_s11 + $0x170] sm:$0xff] }
 0x1ea   : > { %1048 = vmatmul.f32.gmra.mxu1 %v2050_v11  ;;  %1244 = vmatpush.msrb.mxu0 %v1189_v34  ;;  %v1144_v34 = vld [vmem:[%s2735_s11 + $0x58] sm:$0xff]  ;;  %v1215_v35 = vld [vmem:[%s2736_s12 + $0xd0] sm:$0xff] }
 0x1eb   : > { %1325 = vmatpush.msrb.mxu1 %v1160_v41  ;;  %1060 = vmatpush.msra.mxu2 %v874_v37  ;;  %v1178_v41 = vld [vmem:[%s2735_s11 + $0x168] sm:$0xff] }
 0x1ec   : > { %1344 = vmatpush.msra.mxu0 %v1180_v36  ;;  %v1143_v36 = vld [vmem:[%s2735_s11 + $0x50] sm:$0xff]  ;;  %v1214_v37 = vld [vmem:[%s2736_s12 + $0xc8] sm:$0xff] }
 0x1ed   : > { %1326 = vmatpush.msrb.mxu1 %v1159_v43  ;;  %1061 = vmatpush.msra.mxu2 %v873_v39  ;;  %v872_v43 = vld [vmem:[%s2731_s7 + $0x128] sm:$0xff]  ;;  %v1141_v39 = vld [vmem:[%s2735_s11 + $0x40] sm:$0xff] }
 0x1ee   : > { %1345 = vmatpush.msra.mxu0 %v1179_v38  ;;  %v1213_v38 = vld [vmem:[%s2736_s12 + $0xc0] sm:$0xff] }
 0x1ef   : > { %1327 = vmatpush.msrb.mxu1 %v1158_v50  ;;  %1062 = vmatpush.msra.mxu2 %v872_v43  ;;  %v1175_v50 = vld [vmem:[%s2735_s11 + $0x150] sm:$0xff] }
 0x1f0   : > { %1346 = vmatpush.msra.mxu0 %v1178_v41  ;;  %v1140_v41 = vld [vmem:[%s2735_s11 + $0x38] sm:$0xff]  ;;  %v1211_v43 = vld [vmem:[%s2736_s12 + $0xb0] sm:$0xff] }
 0x1f1   : > { %1328 = vmatpush.msrb.mxu1 %v1157_v54  ;;  %1063 = vmatpush.msra.mxu2 %v871_v46  ;;  %v868_v54 = vld [vmem:[%s2731_s7 + $0x108] sm:$0xff] }
 0x1f2   : > { %1549 = vmatmul.msk.f32.vlgmr.msra.gmra.mxu1 %vm582_vm2, %v2129_v60  ;;  %v1154_v60 = vld [vmem:[%s2735_s11 + $0xa8] sm:$0xff]  ;;  %1347 = vmatpush.msra.mxu0 %v1177_v45 }
 0x1f3   : > { %1329 = vmatpush.msrb.mxu1 %v1156_v57  ;;  %v867_v57 = vld [vmem:[%s2731_s7 + $0x100] sm:$0xff]  ;;  %v1210_v45 = vld [vmem:[%s2736_s12 + $0xa8] sm:$0xff] }
 0x1f4   : > { %1348 = vmatpush.msra.mxu0 %v1176_v48  ;;  %v1138_v46 = vld [vmem:[%s2735_s11 + $0x28] sm:$0xff]  ;;  %v1208_v48 = vld [vmem:[%s2736_s12 + $0x98] sm:$0xff] }
 0x1f5   : > { %1330 = vmatpush.msrb.mxu1 %v1155_v62  ;;  %v1170_v62 = vld [vmem:[%s2735_s11 + $0x128] sm:$0xff] }
 0x1f6   : > { %1349 = vmatpush.msra.mxu0 %v1175_v50  ;;  %v1135_v50 = vld [vmem:[%s2735_s11 + $0x10] sm:$0xff] }
 0x1f7   : > { %1331 = vmatpush.msrb.mxu1 %v1154_v60  ;;  %v1166_v60 = vld [vmem:[%s2735_s11 + $0x108] sm:$0xff] }
 0x1f8   : > { %1350 = vmatpush.msra.mxu0 %v1174_v53  ;;  %v1133_v53 = vld [vmem:[%s2735_s11] sm:$0xff] }
 0x1f9   : > { %1332 = vmatpush.msrb.mxu1 %v1153_v8 }
 0x1fa   : > { %1550 = vmatmul.msk.f32.gmra.mxu1 %vm582_vm2, %v2155_v15  ;;  %v1150_v15 = vld [vmem:[%s2735_s11 + $0x88] sm:$0xff]  ;;  %1351 = vmatpush.msra.mxu0 %v1173_v56 }
 0x1fb   : > { %1333 = vmatpush.msrb.mxu1 %v1152_v13  ;;  %v1220_v13 = vld [vmem:[%s2736_s12 + $0xf8] sm:$0xff]  ;;  %v1186_v56 = vld [vmem:[%s2735_s11 + $0x1a8] sm:$0xff] }
 0x1fc   : > { %1352 = vmatpush.msra.mxu0 %v1172_v59  ;;  %v1182_v59 = vld [vmem:[%s2735_s11 + $0x188] sm:$0xff] }
 0x1fd   : > { %1334 = vmatpush.msrb.mxu1 %v1151_v19  ;;  %v1219_v19 = vld [vmem:[%s2736_s12 + $0xf0] sm:$0xff] }
 0x1fe   : > { %1353 = vmatpush.msra.mxu0 %v1171_v61  ;;  %v1181_v61 = vld [vmem:[%s2735_s11 + $0x180] sm:$0xff] }
 0x1ff   : > { %1335 = vmatpush.msrb.mxu1 %v1150_v15 }
 0x200   : > { %1354 = vmatpush.msra.mxu0 %v1170_v62  ;;  %v1413_v62 = vld [vmem:[%s2737_s13 + $0xb8] sm:$0xff] }
 0x201   : > { %1336 = vmatpush.msrb.mxu1 %v1149_v27  ;;  %v1145_v27 = vld [vmem:[%s2735_s11 + $0x60] sm:$0xff] }
 0x202   : > { %1337 = vmatmul.f32.vlgmr.msrb.gmra.mxu1 %v2037_v1  ;;  %v890_v1 = vld [vmem:[%s2731_s7 + $0x1b8] sm:$0xff]  ;;  %1355 = vmatpush.msra.mxu0 %v1169_v63 }
 0x203   : > { %1083 = vmatpush.msra.mxu3 %v890_v1  ;;  %v1142_v1 = vld [vmem:[%s2735_s11 + $0x48] sm:$0xff] }
 0x204   : > { %1356 = vmatpush.msra.mxu0 %v1168_v2 }
 0x205   : > { %1084 = vmatpush.msra.mxu3 %v889_v40  ;;  %v1212_v40 = vld [vmem:[%s2736_s12 + $0xb8] sm:$0xff] }
 0x206   : > { %1357 = vmatpush.msra.mxu0 %v1167_v3 }
 0x207   : > { %1085 = vmatpush.msra.mxu3 %v888_v44  ;;  %v1139_v44 = vld [vmem:[%s2735_s11 + $0x30] sm:$0xff] }
 0x208   : > { %1358 = vmatpush.msra.mxu0 %v1166_v60 }
 0x209   : > { %1086 = vmatpush.msra.mxu3 %v887_v47  ;;  %v1137_v47 = vld [vmem:[%s2735_s11 + $0x20] sm:$0xff] }
 0x20a   : > { %1340 = vmatmul.f32.gmra.mxu1 %v2050_v11  ;;  %v870_v11 = vld [vmem:[%s2731_s7 + $0x118] sm:$0xff]  ;;  %1359 = vmatpush.msra.mxu0 %v1165_v5  ;;  %v1410_v5 = vld [vmem:[%s2737_s13 + $0xa0] sm:$0xff] }
 0x20b   : > { %1064 = vmatpush.msra.mxu2 %v870_v11  ;;  %1087 = vmatpush.msra.mxu3 %v886_v49  ;;  %v1136_v11 = vld [vmem:[%s2735_s11 + $0x18] sm:$0xff]  ;;  %v1207_v49 = vld [vmem:[%s2736_s12 + $0x90] sm:$0xff] }
 0x20d   : > { %1065 = vmatpush.msra.mxu2 %v869_v51  ;;  %1088 = vmatpush.msra.mxu3 %v885_v52  ;;  %v1206_v51 = vld [vmem:[%s2736_s12 + $0x88] sm:$0xff] }
 0x20e   : > { %v1134_v52 = vld [vmem:[%s2735_s11 + $0x8] sm:$0xff] }
 0x20f   : > { %1066 = vmatpush.msra.mxu2 %v868_v54  ;;  %1089 = vmatpush.msra.mxu3 %v884_v55  ;;  %v1188_v54 = vld [vmem:[%s2735_s11 + $0x1b8] sm:$0xff]  ;;  %v1187_v55 = vld [vmem:[%s2735_s11 + $0x1b0] sm:$0xff] }
 0x211   : > { %1067 = vmatpush.msra.mxu2 %v867_v57  ;;  %1090 = vmatpush.msra.mxu3 %v883_v58  ;;  %v1185_v57 = vld [vmem:[%s2735_s11 + $0x1a0] sm:$0xff]  ;;  %v1184_v58 = vld [vmem:[%s2735_s11 + $0x198] sm:$0xff] }
 0x22f   : > { %v1597_v6 = vpop.permute.xlu2 %1596 }
 0x230   : > { %v1599_v7 = vunpack.i.h.bf16 %v1597_v6  ;;  %v1598_v8 = vunpack.i.l.bf16 %v1597_v6 }
 0x232   : > { %v831_v16 = vsel %vm582_vm2, %v805_v9, %v1598_v8  ;;  %v2485_v17 = vsel %vm582_vm2, %v809_v12, %v1599_v7  ;;  %v1408_v8 = vld [vmem:[%s2737_s13 + $0x90] sm:$0xff]  ;;  %v1023_v12 = vpop.f32.mrf.mxu0 }
 0x233   : > { %953 = vmatmul.f32.vlgmr.msrb.gmra.mxu2 %v831_v16  ;;  %976 = vmatmul.f32.vlgmr.msrb.gmra.mxu3 %v2485_v17 }
 0x234   : > { %1245 = vmatmul.f32.vlgmr.msrb.gmra.mxu0 %v831_v16  ;;  %1252 = vmatpush.msrb.mxu3 %v1220_v13  ;;  %v1407_v13 = vld [vmem:[%s2737_s13 + $0x88] sm:$0xff] }
 0x235   : > { %1298 = vmatpush.msrb.mxu2 %v1148_v18 }
 0x236   : > { %1253 = vmatpush.msrb.mxu3 %v1219_v19 }
 0x237   : > { %1299 = vmatpush.msrb.mxu2 %v1147_v20  ;;  %v1602_v15 = vpop.permute.xlu2 %1601 }
 0x238   : > { %v1604_v25 = vunpack.i.h.bf16 %v1602_v15  ;;  %v1603_v26 = vunpack.i.l.bf16 %v1602_v15  ;;  %1254 = vmatpush.msrb.mxu3 %v1218_v21 }
 0x239   : > { %1300 = vmatpush.msrb.mxu2 %v1146_v22 }
 0x23a   : > { %1255 = vmatpush.msrb.mxu3 %v1217_v24  ;;  %v832_v30 = vsel %vm582_vm2, %v806_v28, %v1603_v26  ;;  %v2511_v32 = vsel %vm582_vm2, %v810_v29, %v1604_v25  ;;  %v1609_v25 = vld [vmem:[%s2733_s9] ss:$0 sm:$0xff]  ;;  %v1026_v26 = vpop.f32.mrf.mxu0 }
 0x23b   : > { %1301 = vmatpush.msrb.mxu2 %v1145_v27  ;;  %979 = vmatmul.f32.gmra.mxu3 %v2511_v32  ;;  %v1610_v28 = vld [vmem:[%s2734_s10] ss:$0 sm:$0xff] }
 0x23c   : > { %956 = vmatmul.f32.gmra.mxu2 %v832_v30  ;;  %1248 = vmatmul.f32.gmra.mxu0 %v832_v30 }
 0x23d   : > { %1256 = vmatpush.msrb.mxu3 %v1216_v33  ;;  %1302 = vmatpush.msrb.mxu2 %v1144_v34 }
 0x23f   : > { %1257 = vmatpush.msrb.mxu3 %v1215_v35  ;;  %1303 = vmatpush.msrb.mxu2 %v1143_v36 }
 0x241   : > { %1258 = vmatpush.msrb.mxu3 %v1214_v37  ;;  %1304 = vmatpush.msrb.mxu2 %v1142_v1  ;;  %v1405_v1 = vld [vmem:[%s2737_s13 + $0x78] sm:$0xff] }
 0x242   : > { %1420 = vmatpush.msra.mxu1 %v1405_v1 }
 0x243   : > { %1259 = vmatpush.msrb.mxu3 %v1213_v38  ;;  %1305 = vmatpush.msrb.mxu2 %v1141_v39  ;;  %v1404_v38 = vld [vmem:[%s2737_s13 + $0x70] sm:$0xff] }
 0x244   : > { %1068 = vmatmul.f32.vlgmr.msra.gmra.mxu2 %v2043_v4  ;;  %1547 = vmatmul.msk.f32.vlgmr.msra.gmra.mxu3 %vm582_vm2, %v1959_v31 }
 0x245   : > { %1360 = vmatmul.f32.vlgmr.msra.gmra.mxu0 %v2043_v4  ;;  %1260 = vmatpush.msrb.mxu3 %v1212_v40  ;;  %v1209_v4 = vld [vmem:[%s2736_s12 + $0xa0] sm:$0xff] }
 0x246   : > { %1306 = vmatpush.msrb.mxu2 %v1140_v41  ;;  %v1403_v41 = vld [vmem:[%s2737_s13 + $0x68] sm:$0xff]  ;;  %1421 = vmatpush.msra.mxu1 %v1404_v38 }
 0x247   : > { %1261 = vmatpush.msrb.mxu3 %v1211_v43 }
 0x248   : > { %1307 = vmatpush.msrb.mxu2 %v1139_v44  ;;  %v1402_v44 = vld [vmem:[%s2737_s13 + $0x60] sm:$0xff]  ;;  %1422 = vmatpush.msra.mxu1 %v1403_v41 }
 0x249   : > { %1262 = vmatpush.msrb.mxu3 %v1210_v45 }
 0x24a   : > { %1308 = vmatpush.msrb.mxu2 %v1138_v46  ;;  %v1401_v46 = vld [vmem:[%s2737_s13 + $0x58] sm:$0xff]  ;;  %1423 = vmatpush.msra.mxu1 %v1402_v44 }
 0x24b   : > { %1263 = vmatpush.msrb.mxu3 %v1209_v4 }
 0x24c   : > { %1309 = vmatpush.msrb.mxu2 %v1137_v47  ;;  %1548 = vmatmul.msk.f32.gmra.mxu3 %vm582_vm2, %v1983_v42 }
 0x24d   : > { %1071 = vmatmul.f32.gmra.mxu2 %v2056_v14  ;;  %1363 = vmatmul.f32.gmra.mxu0 %v2056_v14  ;;  %v1205_v14 = vld [vmem:[%s2736_s12 + $0x80] sm:$0xff] }
 0x24e   : > { %1264 = vmatpush.msrb.mxu3 %v1208_v48  ;;  %1310 = vmatpush.msrb.mxu2 %v1136_v11  ;;  %v1400_v48 = vld [vmem:[%s2737_s13 + $0x50] sm:$0xff]  ;;  %v1399_v11 = vld [vmem:[%s2737_s13 + $0x48] sm:$0xff] }
 0x24f   : > { %1424 = vmatpush.msra.mxu1 %v1401_v46 }
 0x250   : > { %1265 = vmatpush.msrb.mxu3 %v1207_v49  ;;  %1311 = vmatpush.msrb.mxu2 %v1135_v50  ;;  %v1398_v49 = vld [vmem:[%s2737_s13 + $0x40] sm:$0xff]  ;;  %v1397_v50 = vld [vmem:[%s2737_s13 + $0x38] sm:$0xff] }
 0x251   : > { %1425 = vmatpush.msra.mxu1 %v1400_v48 }
 0x252   : > { %1266 = vmatpush.msrb.mxu3 %v1206_v51  ;;  %1312 = vmatpush.msrb.mxu2 %v1134_v52  ;;  %v1396_v51 = vld [vmem:[%s2737_s13 + $0x30] sm:$0xff] }
 0x253   : > { %1426 = vmatpush.msra.mxu1 %v1399_v11 }
 0x254   : > { %1267 = vmatpush.msrb.mxu3 %v1205_v14  ;;  %1313 = vmatpush.msrb.mxu2 %v1133_v53  ;;  %v1395_v53 = vld [vmem:[%s2737_s13 + $0x28] sm:$0xff] }
 0x255   : > { %1268 = vmatmul.f32.vlgmr.msrb.gmra.mxu3 %v2485_v17  ;;  %1314 = vmatmul.f32.vlgmr.msrb.gmra.mxu2 %v2034_v0  ;;  %v1183_v0 = vld [vmem:[%s2735_s11 + $0x190] sm:$0xff]  ;;  %v1406_v17 = vld [vmem:[%s2737_s13 + $0x80] sm:$0xff] }
 0x256   : > { %1375 = vmatpush.msra.mxu3 %v1188_v54  ;;  %1559 = vmatpush.msra.mxu2 %v1405_v1  ;;  %v1394_v54 = vld [vmem:[%s2737_s13 + $0x20] sm:$0xff] }
 0x257   : > { %1427 = vmatpush.msra.mxu1 %v1398_v49 }
 0x258   : > { %1376 = vmatpush.msra.mxu3 %v1187_v55  ;;  %1560 = vmatpush.msra.mxu2 %v1404_v38  ;;  %v1393_v55 = vld [vmem:[%s2737_s13 + $0x18] sm:$0xff] }
 0x259   : > { %1428 = vmatpush.msra.mxu1 %v1397_v50 }
 0x25a   : > { %1377 = vmatpush.msra.mxu3 %v1186_v56  ;;  %1561 = vmatpush.msra.mxu2 %v1403_v41  ;;  %v1392_v56 = vld [vmem:[%s2737_s13 + $0x10] sm:$0xff] }
 0x25b   : > { %1429 = vmatpush.msra.mxu1 %v1396_v51 }
 0x25c   : > { %1378 = vmatpush.msra.mxu3 %v1185_v57  ;;  %1562 = vmatpush.msra.mxu2 %v1402_v44 }
 0x25d   : > { %1271 = vmatmul.f32.gmra.mxu3 %v2511_v32  ;;  %1317 = vmatmul.f32.gmra.mxu2 %v2047_v10  ;;  %v1000_v10 = vpop.f32.mrf.mxu1 }
 0x25e   : > { %1379 = vmatpush.msra.mxu3 %v1184_v58  ;;  %1563 = vmatpush.msra.mxu2 %v1401_v46  ;;  %v1391_v58 = vld [vmem:[%s2737_s13 + $0x8] sm:$0xff] }
 0x25f   : > { %1430 = vmatpush.msra.mxu1 %v1395_v53 }
 0x260   : > { %1380 = vmatpush.msra.mxu3 %v1183_v0  ;;  %1564 = vmatpush.msra.mxu2 %v1400_v48  ;;  %v1390_v0 = vld [vmem:[%s2737_s13] sm:$0xff] }
 0x261   : > { %1431 = vmatpush.msra.mxu1 %v1394_v54 }
 0x262   : > { %1381 = vmatpush.msra.mxu3 %v1182_v59  ;;  %1565 = vmatpush.msra.mxu2 %v1399_v11 }
 0x263   : > { %1432 = vmatpush.msra.mxu1 %v1393_v55 }
 0x264   : > { %1382 = vmatpush.msra.mxu3 %v1181_v61  ;;  %1566 = vmatpush.msra.mxu2 %v1398_v49 }
 0x265   : > { %1551 = vmatmul.msk.f32.vlgmr.msra.gmra.mxu3 %vm582_vm2, %v1959_v31  ;;  %v1412_v31 = vld [vmem:[%s2737_s13 + $0xb0] sm:$0xff]  ;;  %v1003_v3 = vpop.f32.mrf.mxu1  ;;  %1433 = vmatpush.msra.mxu1 %v1392_v56 }
 0x266   : > { %1451 = vmatpush.msrb.mxu3 %v1413_v62  ;;  %1567 = vmatpush.msra.mxu2 %v1397_v50 }
 0x267   : > { %1434 = vmatpush.msra.mxu1 %v1391_v58 }
 0x268   : > { %1452 = vmatpush.msrb.mxu3 %v1412_v31  ;;  %1568 = vmatpush.msra.mxu2 %v1396_v51 }
 0x269   : > { %1435 = vmatpush.msra.mxu1 %v1390_v0 }
 0x26a   : > { %1569 = vmatpush.msra.mxu2 %v1395_v53 }
 0x26c   : > { %1570 = vmatpush.msra.mxu2 %v1394_v54 }
 0x26d   : > { %1552 = vmatmul.msk.f32.gmra.mxu3 %vm582_vm2, %v1983_v42  ;;  %v1411_v42 = vld [vmem:[%s2737_s13 + $0xa8] sm:$0xff]  ;;  %v1046_v19 = vpop.f32.mrf.mxu1 }
 0x26e   : > { %1453 = vmatpush.msrb.mxu3 %v1411_v42  ;;  %1571 = vmatpush.msra.mxu2 %v1393_v55 }
 0x270   : > { %1454 = vmatpush.msrb.mxu3 %v1410_v5  ;;  %1572 = vmatpush.msra.mxu2 %v1392_v56 }
 0x272   : > { %1455 = vmatpush.msrb.mxu3 %v1409_v23  ;;  %1573 = vmatpush.msra.mxu2 %v1391_v58 }
 0x274   : > { %1456 = vmatpush.msrb.mxu3 %v1408_v8  ;;  %1574 = vmatpush.msra.mxu2 %v1390_v0 }
 0x275   : > { %v1049_v32 = vpop.f32.mrf.mxu1 }
 0x276   : > { %1457 = vmatpush.msrb.mxu3 %v1407_v13 }
 0x278   : > { %1458 = vmatpush.msrb.mxu3 %v1406_v17 }
 0x27d   : > { %v1292_v31 = vpop.f32.mrf.mxu1 }
 0x2b1   : > { %v1246_v5 = vpop.f32.mrf.mxu0 }
 0x2b6   : > { %v954_v63 = vpop.f32.mrf.mxu2  ;;  %v977_v2 = vpop.f32.mrf.mxu3 }
 0x2b7   : > { %v978_v60 = vadd.f32 %v977_v2, %v954_v63 }
 0x2b9   : > { %v1001_v6 = vadd.f32 %v1000_v10, %v978_v60 }
 0x2bb   : > { %v1024_v16 = vadd.f32 %v1023_v12, %v1001_v6 }
 0x2bd   : > { %v1047_v20 = vadd.f32 %v1046_v19, %v1024_v16 }
 0x2be   : > { %v980_v7 = vpop.f32.mrf.mxu3 }
 0x2bf   : > { %v957_v9 = vpop.f32.mrf.mxu2 }
 0x2c0   : > { %v981_v18 = vadd.f32 %v980_v7, %v957_v9  ;;  %v1249_v9 = vpop.f32.mrf.mxu0 }
 0x2c2   : > { %v1004_v21 = vadd.f32 %v1003_v3, %v981_v18  ;;  %v1295_v3 = vpop.f32.mrf.mxu1 }
 0x2c4   : > { %v1027_v29 = vadd.f32 %v1026_v26, %v1004_v21  ;;  %v1611_v26 = vld [vmem:[%s2738_s14] ss:$0 sm:$0xff] }
 0x2c6   : > { %v1050_v34 = vadd.f32 %v1049_v32, %v1027_v29 }
 0x2c7   : > { %v1069_v22 = vpop.f32.mrf.mxu2  ;;  %v1092_v24 = vpop.f32.mrf.mxu3 }
 0x2c8   : > { %v1070_v15 = vadd.f32 %v1069_v22, %v1047_v20  ;;  %v1361_v19 = vpop.f32.mrf.mxu0 }
 0x2ca   : > { %v1093_v27 = vadd.f32 %v1092_v24, %v1070_v15  ;;  %v1338_v23 = vpop.f32.mrf.mxu1 }
 0x2cc   : > { %v1102_v30 = vmul.f32 %v1609_v25, %v1093_v27 }
 0x2ce   : > { %v1108_v33 = vadd.f32 %v1610_v28, %v1102_v30 }
 0x2cf   : > { %v1095_v39 = vpop.f32.mrf.mxu3 }
 0x2d0   : > { %v1110_v35 = vmax.f32 %v1108_v33, 0.0  ;;  %v1072_v36 = vpop.f32.mrf.mxu2 }
 0x2d1   : > { %v1073_v37 = vadd.f32 %v1072_v36, %v1050_v34  ;;  %v1364_v34 = vpop.f32.mrf.mxu0 }
 0x2d2   : > { %1112 = vst.msk [vmem:[#allocation4 + $0x1] sm:$0xff] %vm582_vm2, %v1110_v35  ;;  %v1341_v16 = vpop.f32.mrf.mxu1 }
 0x2d3   : > { %v1096_v40 = vadd.f32 %v1095_v39, %v1073_v37 }
 0x2d5   : > { %v1103_v43 = vmul.f32 %v1609_v25, %v1096_v40 }
 0x2d7   : > { %v1109_v45 = vadd.f32 %v1610_v28, %v1103_v43 }
 0x2d8   : > { %v1269_v42 = vpop.f32.mrf.mxu3  ;;  %v1315_v12 = vpop.f32.mrf.mxu2 }
 0x2d9   : > { %v1111_v4 = vmax.f32 %v1109_v45, 0.0  ;;  %v1119_v47 = vld [vmem:[#allocation4 + $0x1] sm:$0xff]  ;;  %v1270_v7 = vadd.f32 %v1269_v42, %v1246_v5 }
 0x2da   : > { %1125 = vrot.lane.b32.xlu1 %v1119_v47, %s1621_s28  ;;  %v1117_v61 = vld [vmem:[#allocation4] sm:$0xff] }
 0x2db   : > { %1113 = vst.msk [vmem:[#allocation4 + $0x9] sm:$0xff] %vm582_vm2, %v1111_v4  ;;  %v1293_v8 = vadd.f32 %v1292_v31, %v1270_v7 }
 0x2dd   : > { %v1316_v13 = vadd.f32 %v1315_v12, %v1293_v8 }
 0x2df   : > { %v1339_v18 = vadd.f32 %v1338_v23, %v1316_v13 }
 0x2e0   : > { %v1272_v60 = vpop.f32.mrf.mxu3  ;;  %v1318_v29 = vpop.f32.mrf.mxu2 }
 0x2e1   : > { %v1273_v20 = vadd.f32 %v1272_v60, %v1249_v9  ;;  %v1362_v21 = vadd.f32 %v1361_v19, %v1339_v18 }
 0x2e2   : > { %v1121_v52 = vld [vmem:[#allocation4 + $0x2] sm:$0xff]  ;;  %v1122_v57 = vld [vmem:[#allocation4 + $0xa] sm:$0xff] }
 0x2e3   : > { %v1120_v14 = vld [vmem:[#allocation4 + $0x9] sm:$0xff]  ;;  %1553 = vmatmul.msk.f32.vlgmr.msrb.gmra.mxu3 %vm582_vm2, %v1121_v52  ;;  %v1296_v27 = vadd.f32 %v1295_v3, %v1273_v20 }
 0x2e4   : > { %1127 = vrot.lane.b32.xlu0 %v1120_v14, %s1621_s28  ;;  %v1118_v63 = vld [vmem:[#allocation4 + $0x8] sm:$0xff] }
 0x2e5   : > { %v1319_v32 = vadd.f32 %v1318_v29, %v1296_v27 }
 0x2e7   : > { %v1342_v33 = vadd.f32 %v1341_v16, %v1319_v32 }
 0x2e8   : > { %v1384_v6 = vpop.f32.mrf.mxu3 }
 0x2e9   : > { %v1385_v24 = vadd.f32 %v1384_v6, %v1362_v21  ;;  %v1365_v35 = vadd.f32 %v1364_v34, %v1342_v33 }
 0x2eb   : > { %1554 = vmatmul.msk.f32.gmra.mxu3 %vm582_vm2, %v1122_v57 }
 0x2f0   : > { %v1387_v17 = vpop.f32.mrf.mxu3 }
 0x2f1   : > { %v1388_v1 = vadd.f32 %v1387_v17, %v1365_v35 }
 0x34c   : > { %v1126_v59 = vpop.permute.xlu1 %1125 }
 0x34d   : > { %v1131_v10 = vsel %vm582_vm2, %v1117_v61, %v1126_v59 }
 0x34e   : > { %1436 = vmatmul.f32.vlgmr.msra.gmra.mxu1 %v1131_v10 }
 0x356   : > { %v1128_v62 = vpop.permute.xlu0 %1127 }
 0x357   : > { %v1132_v2 = vsel %vm582_vm2, %v1118_v63, %v1128_v62 }
 0x358   : > { %1439 = vmatmul.f32.vlgmr.msra.gmra.mxu2 %v1132_v2 }
 0x366   : > { %v1460_v22 = vpop.f32.mrf.mxu3 }
 0x36e   : > { %v1463_v36 = vpop.f32.mrf.mxu3 }
 0x3cb   : > { %v1437_v15 = vpop.f32.mrf.mxu1 }
 0x3cc   : > { %v1461_v25 = vadd.f32 %v1460_v22, %v1437_v15 }
 0x3ce   : > { %v1466_v28 = vadd.f32 %v1461_v25, %v1385_v24 }
 0x3d0   : > { %v1472_v30 = vadd.f32 %v1611_v26, %v1466_v28 }
 0x3d2   : > { %1475 = vst.msk [vmem:[%s494_s24] sm:$0xff] %vm1474_vm5, %v1472_v30 }
 0x3db   : > { %v1440_v37 = vpop.f32.mrf.mxu2 }
 0x3dc   : > { %v1464_v38 = vadd.f32 %v1463_v36, %v1440_v37 }
 0x3de   : > { %v1467_v39 = vadd.f32 %v1464_v38, %v1388_v1 }
 0x3e0   : > { %v1473_v40 = vadd.f32 %v1611_v26, %v1467_v39 }
 0x3e2   : > { %1476 = vst.msk [vmem:[%s494_s24 + $0x8] sm:$0xff] %vm1474_vm5, %v1473_v40 }
 0x3e3 PF: > { %s25_s18 = sadd.s32 1, %s1618_s18  }
 0x3e4   : > { %p22_p4 = scmp.ge.s32.totalorder %s25_s18, 4  }
 0x3e6   :  { %24 = sbr.rel (!%p22_p4) target bundleno = 1 (0x1), region = 110 }

</bundles_post_ra>
